<compile_context>
chip_gen: v7x
topology: tpu7x:2x2x1
jax: 0.10.0
libtpu: 0.0.40
codegen_flags: <defaults>
</compile_context>

<pallas_src>
import functools

import jax
import jax.numpy as jnp
from jax.experimental import pallas as pl
from jax.experimental.pallas import tpu as pltpu


_SQRT_HALF = 0.7071067811865476


def _erf(z):
    # Abramowitz & Stegun 7.1.26 (max abs err ~1.5e-7). Built only from
    # exp/mul/add/where so it lowers on every Mosaic version (exact lax.erf
    # support is version-dependent); numerically indistinguishable from
    # nn.GELU()'s exact erf at our tolerances.
    az = jnp.abs(z)
    t = 1.0 / (1.0 + 0.3275911 * az)
    poly = t * (0.254829592 + t * (-0.284496736 + t * (1.421413741
               + t * (-1.453152027 + t * 1.061405429))))
    e = 1.0 - poly * jnp.exp(-az * az)
    return jnp.where(z < 0.0, -e, e)


def _gelu(z, approx):
    if approx:
        # tanh GELU: transcendental goes to the (idle) EUP slot instead of a long
        # f32 VPU polynomial; numerics differ from nn.GELU() by <~1e-3.
        return jax.nn.gelu(z, approximate=True)
    return 0.5 * z * (1.0 + _erf(z * _SQRT_HALF))


def block_kernel(x_ref, g1_ref, b1_ref, wqkv_ref, bqkv_ref, wproj_ref, bproj_ref,
                 g2_ref, b2_ref, w1_ref, bb1_ref, w2_ref, bb2_ref, o_ref,
                 qkv_scr, attn_scr, attn_mc,
                 *, heads, n_real, approx_gelu, eps=1e-5, mlp_block=1024):
    Bt, N, C = x_ref.shape
    hd = C // heads
    M = Bt * N
    mlp = w1_ref.shape[1]

    def layer_norm(z, g_ref, b_ref):
        mu = jnp.mean(z, axis=-1, keepdims=True)
        var = jnp.mean((z - mu) ** 2, axis=-1, keepdims=True)
        return (z - mu) * jax.lax.rsqrt(var + eps) * g_ref[...] + b_ref[...]

    x = x_ref[...].reshape(M, C).astype(jnp.float32)

    # ---- LayerNorm 1 + qkv projection (bf16 operands, f32 MXU accumulation) ----
    xn = layer_norm(x, g1_ref, b1_ref).astype(jnp.bfloat16)
    qkv = (jnp.dot(xn, wqkv_ref[...], preferred_element_type=jnp.float32)
           + bqkv_ref[...]).astype(jnp.bfloat16)      # scale pre-folded into wq/bq

    # Repack the lane-major (M, 3C) qkv into a head-major scratch so the head
    # loop below can use a *dynamic* head index (bounded live ranges, no unroll).
    for i in range(3 * heads):                        # i = {q,k,v}*heads + h
        qkv_scr[i] = qkv[:, i * hd:(i + 1) * hd].reshape(Bt, N, hd)

    key_mask = None
    if n_real < N:                                    # padded tokens: mask keys
        col = jax.lax.broadcasted_iota(jnp.int32, (1, 1, N), 2)
        key_mask = jnp.where(col >= n_real, jnp.float32(-1e30), jnp.float32(0.0))

    # ---- multi-head self-attention: one head in flight at a time ----
    @pl.loop(0, heads)
    def _(h):
        qh = qkv_scr[h]                               # (Bt, N, hd) bf16
        kh = qkv_scr[heads + h]
        vh = qkv_scr[2 * heads + h]
        s = jax.lax.dot_general(qh, kh, (((2,), (2,)), ((0,), (0,))),
                                preferred_element_type=jnp.float32)   # (Bt, N, N)
        if key_mask is not None:
            s = s + key_mask
        s = s - jnp.max(s, axis=-1, keepdims=True)
        p = jnp.exp(s)
        p = p * pl.reciprocal(jnp.sum(p, axis=-1, keepdims=True), approx=True)
        o = jax.lax.dot_general(p.astype(jnp.bfloat16), vh,
                                (((2,), (1,)), ((0,), (0,))),
                                preferred_element_type=jnp.float32)   # (Bt, N, hd)
        attn_scr[h] = o.astype(jnp.bfloat16)

    # Reassemble a lane-dense (M, C) operand so the output projection stays one
    # dense full-depth MXU matmul (static h -> static slices, no concat tree).
    for h in range(heads):
        attn_mc[:, h * hd:(h + 1) * hd] = attn_scr[h].reshape(M, hd)

    y = (jnp.dot(attn_mc[...], wproj_ref[...], preferred_element_type=jnp.float32)
         + bproj_ref[...])
    x1 = x + y                                        # first residual

    # ---- LayerNorm 2 + MLP, tiled over the hidden dim ----
    xn2 = layer_norm(x1, g2_ref, b2_ref).astype(jnp.bfloat16)
    acc = x1 + bb2_ref[...]                           # fc2 bias folded in once
    for j0 in range(0, mlp, mlp_block):
        jw = min(mlp_block, mlp - j0)
        hblk = (jnp.dot(xn2, w1_ref[:, j0:j0 + jw],
                        preferred_element_type=jnp.float32)
                + bb1_ref[:, j0:j0 + jw])
        hblk = _gelu(hblk, approx_gelu).astype(jnp.bfloat16)
        acc = acc + jnp.dot(hblk, w2_ref[j0:j0 + jw, :],
                            preferred_element_type=jnp.float32)

    o_ref[...] = acc.reshape(Bt, N, C).astype(o_ref.dtype)


def _tpu_vmem_capacity_bytes():
    try:
        info = pltpu.get_tpu_info()
        for name in ("vmem_capacity_bytes", "vmem_bytes", "vmem_size_bytes"):
            v = getattr(info, name, None)
            if v:
                return int(v)
    except Exception:
        pass
    return 64 * 1024 * 1024                           # conservative (v7x-sized)


def _pick_block_b(B, max_bt, prefer_even_steps):
    divisors = [bb for bb in range(1, min(max_bt, B) + 1) if B % bb == 0]
    for need_even in ((True, False) if prefer_even_steps else (False,)):
        good = [bb for bb in divisors
                if B // bb >= 2 and (not need_even or (B // bb) % 2 == 0)]
        if good:
            return max(good)
    return B                                          # single grid step


def vit_block(x, params, heads, block_b=None, approx_gelu=False):
    B, N, C = x.shape
    mlp = params["w1"].shape[1]
    hd = C // heads

    # --- generation-aware tiling: v7x (64 MiB VMEM) vs v5e/v6e (128 MiB) ---
    cap = _tpu_vmem_capacity_bytes()
    if cap <= 64 * 1024 * 1024:
        vmem_limit = min(cap - 8 * 1024 * 1024, 56 * 1024 * 1024)
        max_bt, prefer_even = 2, True                 # even steps keep both v7x TCs busy
    else:
        vmem_limit = min(cap - 32 * 1024 * 1024, 96 * 1024 * 1024)
        max_bt, prefer_even = 8, False
    bt = _pick_block_b(B, max_bt, prefer_even) if block_b is None else block_b
    assert B % bt == 0, "block_b must divide batch size"

    # --- pad tokens to a sublane multiple: free in-kernel reshapes, dense score
    #     tiles, unmasked output stores (pad keys are masked in-kernel) ---
    n_pad = -(-N // 8) * 8
    x_p = x if n_pad == N else jnp.pad(x, ((0, 0), (0, n_pad - N), (0, 0)))

    # --- fold the attention scale into the q columns of wqkv / bqkv (would be a
    #     one-time transform in a real model; removes an (M, C) VPU mul/step) ---
    scale = float(hd) ** -0.5
    wqkv, bqkv = params["wqkv"], params["bqkv"]
    wqkv_s = jnp.concatenate(
        [(wqkv[:, :C].astype(jnp.float32) * scale).astype(wqkv.dtype), wqkv[:, C:]],
        axis=1)
    bqkv_s = jnp.concatenate([bqkv[:, :C] * scale, bqkv[:, C:]], axis=1)

    m_tot = B * n_pad
    flops = 2 * m_tot * C * (4 * C + 2 * mlp) + 4 * B * heads * n_pad * n_pad * hd
    transc = B * heads * n_pad * n_pad + m_tot * mlp
    weight_bytes = sum(int(p.size) * p.dtype.itemsize
                       for p in (wqkv_s, bqkv_s, params["wproj"], params["bproj"],
                                 params["w1"], params["b1m"], params["w2"],
                                 params["b2m"], params["g1"], params["b1"],
                                 params["g2"], params["b2"]))
    bytes_acc = 2 * int(x_p.size) * x_p.dtype.itemsize + weight_bytes

    args = (x_p, params["g1"], params["b1"], wqkv_s, bqkv_s,
            params["wproj"], params["bproj"], params["g2"], params["b2"],
            params["w1"], params["b1m"], params["w2"], params["b2m"])

    def run(single_buffer_weights):
        def wspec(shp):
            idx = lambda b, _n=len(shp): (0,) * _n
            if single_buffer_weights:
                # Constant block index -> nothing to double-buffer: keep one
                # resident copy instead of two (halves resident weight VMEM).
                return pl.BlockSpec(shp, idx, pipeline_mode=pl.Buffered(1))
            return pl.BlockSpec(shp, idx)

        in_specs = [
            pl.BlockSpec((bt, n_pad, C), lambda b: (b, 0, 0)),   # x
            wspec((1, C)), wspec((1, C)),                        # norm1 gamma/beta
            wspec((C, 3 * C)), wspec((1, 3 * C)),                # qkv W (bf16), bias
            wspec((C, C)), wspec((1, C)),                        # proj W, bias
            wspec((1, C)), wspec((1, C)),                        # norm2 gamma/beta
            wspec((C, mlp)), wspec((1, mlp)),                    # fc1 W, bias
            wspec((mlp, C)), wspec((1, C)),                      # fc2 W, bias
        ]
        return pl.pallas_call(
            functools.partial(block_kernel, heads=heads, n_real=N,
                              approx_gelu=approx_gelu),
            out_shape=jax.ShapeDtypeStruct((B, n_pad, C), x.dtype),
            grid=(B // bt,),
            in_specs=in_specs,
            out_specs=pl.BlockSpec((bt, n_pad, C), lambda b: (b, 0, 0)),
            scratch_shapes=[
                pltpu.VMEM((3 * heads, bt, n_pad, hd), jnp.bfloat16),  # q/k/v head-major
                pltpu.VMEM((heads, bt, n_pad, hd), jnp.bfloat16),      # head outputs
                pltpu.VMEM((bt * n_pad, C), jnp.bfloat16),             # attn, lane-dense
            ],
            compiler_params=pltpu.CompilerParams(
                dimension_semantics=("parallel",),
                vmem_limit_bytes=int(vmem_limit)),
            cost_estimate=pl.CostEstimate(flops=int(flops),
                                          transcendentals=int(transc),
                                          bytes_accessed=int(bytes_acc)),
        )(*args)

    try:
        out = run(True)
    except Exception:
        # pl.Buffered(1) (single-buffered resident weights) unsupported on this
        # jax version -> fall back to default double-buffering.
        out = run(False)

    return out if n_pad == N else out[:, :N, :]


def ref_block(x, p, heads):
    # Plain-JAX reference matching the PyTorch forward (dropout/drop_path = identity).
    # bf16 weights are promoted to f32 here, so the reference uses the same
    # quantized weight values but full-precision activations.
    def ln(z, g, b):
        mu = z.mean(-1, keepdims=True)
        var = ((z - mu) ** 2).mean(-1, keepdims=True)
        return (z - mu) / jnp.sqrt(var + 1e-5) * g + b

    B, N, C = x.shape
    hd = C // heads
    xn = ln(x, p["g1"][0], p["b1"][0])
    qkv = xn @ p["wqkv"].astype(jnp.float32) + p["bqkv"][0]
    q, k, v = jnp.split(qkv, 3, axis=-1)
    q = q.reshape(B, N, heads, hd).transpose(0, 2, 1, 3)
    k = k.reshape(B, N, heads, hd).transpose(0, 2, 1, 3)
    v = v.reshape(B, N, heads, hd).transpose(0, 2, 1, 3)
    a = jax.nn.softmax(q @ k.transpose(0, 1, 3, 2) * hd ** -0.5, axis=-1)
    o = (a @ v).transpose(0, 2, 1, 3).reshape(B, N, C)
    x = x + (o @ p["wproj"].astype(jnp.float32) + p["bproj"][0])
    xn2 = ln(x, p["g2"][0], p["b2"][0])
    h = jax.nn.gelu(xn2 @ p["w1"].astype(jnp.float32) + p["b1m"][0], approximate=False)
    return x + (h @ p["w2"].astype(jnp.float32) + p["b2m"][0])


if __name__ == "__main__":
    B, N, C, HEADS, MLP = 2, 8, 32, 4, 64
    key = jax.random.PRNGKey(0)
    ks = jax.random.split(key, 8)

    x = jax.random.normal(ks[0], (B, N, C), dtype=jnp.float32)

    # Deterministic synthetic parameters. Linear weights are pre-transposed to
    # (in_features, out_features) so the kernel computes x @ W directly
    # (equivalent to PyTorch's x @ W_pt.T) and stored in bf16 (HBM/VMEM savings;
    # MXU-native dtype). Biases / LayerNorm params stay f32.
    params = {
        "g1":    jnp.ones((1, C), jnp.float32),
        "b1":    jnp.zeros((1, C), jnp.float32),
        "wqkv":  (0.05 * jax.random.normal(ks[1], (C, 3 * C), jnp.float32)).astype(jnp.bfloat16),
        "bqkv":  0.01 * jax.random.normal(ks[2], (1, 3 * C), jnp.float32),
        "wproj": (0.05 * jax.random.normal(ks[3], (C, C), jnp.float32)).astype(jnp.bfloat16),
        "bproj": 0.01 * jax.random.normal(ks[4], (1, C), jnp.float32),
        "g2":    jnp.ones((1, C), jnp.float32),
        "b2":    jnp.zeros((1, C), jnp.float32),
        "w1":    (0.05 * jax.random.normal(ks[5], (C, MLP), jnp.float32)).astype(jnp.bfloat16),
        "b1m":   0.01 * jax.random.normal(ks[6], (1, MLP), jnp.float32),
        "w2":    (0.05 * jax.random.normal(ks[7], (MLP, C), jnp.float32)).astype(jnp.bfloat16),
        "b2m":   jnp.zeros((1, C), jnp.float32),
    }

    out = vit_block(x, params, HEADS)
    out = jax.block_until_ready(out)

    ref = ref_block(x, params, HEADS)
    assert out.shape == (B, N, C)
    # bf16 matmul operands (f32 accumulation) + approx softmax reciprocal vs an
    # all-f32 reference -> loosened tolerance.
    assert jnp.allclose(out, ref, atol=3e-2, rtol=3e-2), "mismatch vs JAX reference"

    print("KERNEL_OK")
</pallas_src>

<mosaic_0001>
module attributes {stable_mosaic.version = 11 : i64} {
  func.func @block_kernel(%arg0: i32, %arg1: memref<1x8x32xf32, #tpu.memory_space<vmem>>, %arg2: memref<1x32xf32, #tpu.memory_space<vmem>>, %arg3: memref<1x32xf32, #tpu.memory_space<vmem>>, %arg4: memref<32x96xbf16, #tpu.memory_space<vmem>>, %arg5: memref<1x96xf32, #tpu.memory_space<vmem>>, %arg6: memref<32x32xbf16, #tpu.memory_space<vmem>>, %arg7: memref<1x32xf32, #tpu.memory_space<vmem>>, %arg8: memref<1x32xf32, #tpu.memory_space<vmem>>, %arg9: memref<1x32xf32, #tpu.memory_space<vmem>>, %arg10: memref<32x64xbf16, #tpu.memory_space<vmem>>, %arg11: memref<1x64xf32, #tpu.memory_space<vmem>>, %arg12: memref<64x32xbf16, #tpu.memory_space<vmem>>, %arg13: memref<1x32xf32, #tpu.memory_space<vmem>>, %arg14: memref<1x8x32xf32, #tpu.memory_space<vmem>>, %arg15: memref<12x1x8x8xbf16, #tpu.memory_space<vmem>>, %arg16: memref<4x1x8x8xbf16, #tpu.memory_space<vmem>>, %arg17: memref<8x32xbf16, #tpu.memory_space<vmem>>) attributes {dimension_semantics = [#tpu.dimension_semantics<parallel>], iteration_bounds = array<i64: 2>, scalar_prefetch = 0 : i64, scratch_operands = 3 : i64, tpu.core_type = #tpu.core_type<tc>, window_params = [{transform_indices = @transform_0, window_bounds = array<i64: 1, 8, 32>}, {pipeline_mode = #tpu.pipeline_mode<synchronous>, transform_indices = @transform_1, window_bounds = array<i64: 1, 32>}, {pipeline_mode = #tpu.pipeline_mode<synchronous>, transform_indices = @transform_2, window_bounds = array<i64: 1, 32>}, {pipeline_mode = #tpu.pipeline_mode<synchronous>, transform_indices = @transform_3, window_bounds = array<i64: 32, 96>}, {pipeline_mode = #tpu.pipeline_mode<synchronous>, transform_indices = @transform_4, window_bounds = array<i64: 1, 96>}, {pipeline_mode = #tpu.pipeline_mode<synchronous>, transform_indices = @transform_5, window_bounds = array<i64: 32, 32>}, {pipeline_mode = #tpu.pipeline_mode<synchronous>, transform_indices = @transform_6, window_bounds = array<i64: 1, 32>}, {pipeline_mode = #tpu.pipeline_mode<synchronous>, transform_indices = @transform_7, window_bounds = array<i64: 1, 32>}, {pipeline_mode = #tpu.pipeline_mode<synchronous>, transform_indices = @transform_8, window_bounds = array<i64: 1, 32>}, {pipeline_mode = #tpu.pipeline_mode<synchronous>, transform_indices = @transform_9, window_bounds = array<i64: 32, 64>}, {pipeline_mode = #tpu.pipeline_mode<synchronous>, transform_indices = @transform_10, window_bounds = array<i64: 1, 64>}, {pipeline_mode = #tpu.pipeline_mode<synchronous>, transform_indices = @transform_11, window_bounds = array<i64: 64, 32>}, {pipeline_mode = #tpu.pipeline_mode<synchronous>, transform_indices = @transform_12, window_bounds = array<i64: 1, 32>}, {transform_indices = @transform_13, window_bounds = array<i64: 1, 8, 32>}]} {
    %c0 = arith.constant 0 : index
    %c0_0 = arith.constant 0 : index
    %c0_1 = arith.constant 0 : index
    %0 = vector.load %arg1[%c0, %c0_0, %c0_1] : memref<1x8x32xf32, #tpu.memory_space<vmem>>, vector<1x8x32xf32>
    %1 = vector.shape_cast %0 : vector<1x8x32xf32> to vector<8x32xf32>
    %cst = arith.constant dense<0.000000e+00> : vector<8xf32>
    %2 = vector.multi_reduction <add>, %1, %cst [1] : vector<8x32xf32> to vector<8xf32>
    %3 = vector.shape_cast %2 : vector<8xf32> to vector<8x1xf32>
    %cst_2 = arith.constant 3.200000e+01 : f32
    %4 = vector.broadcast %cst_2 : f32 to vector<8x1xf32>
    %5 = arith.divf %3, %4 : vector<8x1xf32>
    %6 = vector.broadcast %5 : vector<8x1xf32> to vector<8x32xf32>
    %7 = arith.subf %1, %6 : vector<8x32xf32>
    %8 = arith.mulf %7, %7 : vector<8x32xf32>
    %cst_3 = arith.constant dense<0.000000e+00> : vector<8xf32>
    %9 = vector.multi_reduction <add>, %8, %cst_3 [1] : vector<8x32xf32> to vector<8xf32>
    %10 = vector.shape_cast %9 : vector<8xf32> to vector<8x1xf32>
    %cst_4 = arith.constant 3.200000e+01 : f32
    %11 = vector.broadcast %cst_4 : f32 to vector<8x1xf32>
    %12 = arith.divf %10, %11 : vector<8x1xf32>
    %13 = vector.broadcast %5 : vector<8x1xf32> to vector<8x32xf32>
    %14 = arith.subf %1, %13 : vector<8x32xf32>
    %cst_5 = arith.constant 9.99999974E-6 : f32
    %15 = vector.broadcast %cst_5 : f32 to vector<8x1xf32>
    %16 = arith.addf %12, %15 : vector<8x1xf32>
    %17 = math.rsqrt %16 : vector<8x1xf32>
    %18 = vector.broadcast %17 : vector<8x1xf32> to vector<8x32xf32>
    %19 = arith.mulf %14, %18 : vector<8x32xf32>
    %c0_6 = arith.constant 0 : index
    %c0_7 = arith.constant 0 : index
    %20 = vector.load %arg2[%c0_6, %c0_7] : memref<1x32xf32, #tpu.memory_space<vmem>>, vector<1x32xf32>
    %21 = vector.broadcast %20 : vector<1x32xf32> to vector<8x32xf32>
    %22 = arith.mulf %19, %21 : vector<8x32xf32>
    %c0_8 = arith.constant 0 : index
    %c0_9 = arith.constant 0 : index
    %23 = vector.load %arg3[%c0_8, %c0_9] : memref<1x32xf32, #tpu.memory_space<vmem>>, vector<1x32xf32>
    %24 = vector.broadcast %23 : vector<1x32xf32> to vector<8x32xf32>
    %25 = arith.addf %22, %24 : vector<8x32xf32>
    %26 = arith.truncf %25 : vector<8x32xf32> to vector<8x32xbf16>
    %c0_10 = arith.constant 0 : index
    %c0_11 = arith.constant 0 : index
    %27 = vector.load %arg4[%c0_10, %c0_11] : memref<32x96xbf16, #tpu.memory_space<vmem>>, vector<32x96xbf16>
    %cst_12 = arith.constant dense<0.000000e+00> : vector<8x96xf32>
    %28 = tpu.matmul %26, %27, %cst_12 {dimension_numbers = #tpu.dot_dimension_numbers<[1], [0], [0], [1], [0, 0, 1, 1], [], []>} : vector<8x32xbf16>, vector<32x96xbf16>, vector<8x96xf32> -> vector<8x96xf32>
    %c0_13 = arith.constant 0 : index
    %c0_14 = arith.constant 0 : index
    %29 = vector.load %arg5[%c0_13, %c0_14] : memref<1x96xf32, #tpu.memory_space<vmem>>, vector<1x96xf32>
    %30 = vector.broadcast %29 : vector<1x96xf32> to vector<8x96xf32>
    %31 = arith.addf %28, %30 : vector<8x96xf32>
    %32 = arith.truncf %31 : vector<8x96xf32> to vector<8x96xbf16>
    %33 = vector.extract_strided_slice %32 {offsets = [0, 0], sizes = [8, 8], strides = [1, 1]} : vector<8x96xbf16> to vector<8x8xbf16>
    %34 = vector.shape_cast %33 : vector<8x8xbf16> to vector<1x8x8xbf16>
    %c0_15 = arith.constant 0 : index
    %c0_16 = arith.constant 0 : index
    %c0_17 = arith.constant 0 : index
    %c0_18 = arith.constant 0 : index
    %35 = vector.load %arg15[%c0_15, %c0_16, %c0_17, %c0_18] : memref<12x1x8x8xbf16, #tpu.memory_space<vmem>>, vector<1x1x8x8xbf16>
    %36 = vector.shape_cast %35 : vector<1x1x8x8xbf16> to vector<1x8x8xbf16>
    %37 = vector.shape_cast %34 : vector<1x8x8xbf16> to vector<1x1x8x8xbf16>
    tpu.vector_store %arg15[%c0_15, %c0_16, %c0_17, %c0_18], %37 {strides = array<i32>} : memref<12x1x8x8xbf16, #tpu.memory_space<vmem>>, vector<1x1x8x8xbf16>,
    %38 = vector.extract_strided_slice %32 {offsets = [0, 8], sizes = [8, 8], strides = [1, 1]} : vector<8x96xbf16> to vector<8x8xbf16>
    %39 = vector.shape_cast %38 : vector<8x8xbf16> to vector<1x8x8xbf16>
    %c1 = arith.constant 1 : index
    %c0_19 = arith.constant 0 : index
    %c0_20 = arith.constant 0 : index
    %c0_21 = arith.constant 0 : index
    %40 = vector.load %arg15[%c1, %c0_19, %c0_20, %c0_21] : memref<12x1x8x8xbf16, #tpu.memory_space<vmem>>, vector<1x1x8x8xbf16>
    %41 = vector.shape_cast %40 : vector<1x1x8x8xbf16> to vector<1x8x8xbf16>
    %42 = vector.shape_cast %39 : vector<1x8x8xbf16> to vector<1x1x8x8xbf16>
    tpu.vector_store %arg15[%c1, %c0_19, %c0_20, %c0_21], %42 {strides = array<i32>} : memref<12x1x8x8xbf16, #tpu.memory_space<vmem>>, vector<1x1x8x8xbf16>,
    %43 = vector.extract_strided_slice %32 {offsets = [0, 16], sizes = [8, 8], strides = [1, 1]} : vector<8x96xbf16> to vector<8x8xbf16>
    %44 = vector.shape_cast %43 : vector<8x8xbf16> to vector<1x8x8xbf16>
    %c2 = arith.constant 2 : index
    %c0_22 = arith.constant 0 : index
    %c0_23 = arith.constant 0 : index
    %c0_24 = arith.constant 0 : index
    %45 = vector.load %arg15[%c2, %c0_22, %c0_23, %c0_24] : memref<12x1x8x8xbf16, #tpu.memory_space<vmem>>, vector<1x1x8x8xbf16>
    %46 = vector.shape_cast %45 : vector<1x1x8x8xbf16> to vector<1x8x8xbf16>
    %47 = vector.shape_cast %44 : vector<1x8x8xbf16> to vector<1x1x8x8xbf16>
    tpu.vector_store %arg15[%c2, %c0_22, %c0_23, %c0_24], %47 {strides = array<i32>} : memref<12x1x8x8xbf16, #tpu.memory_space<vmem>>, vector<1x1x8x8xbf16>,
    %48 = vector.extract_strided_slice %32 {offsets = [0, 24], sizes = [8, 8], strides = [1, 1]} : vector<8x96xbf16> to vector<8x8xbf16>
    %49 = vector.shape_cast %48 : vector<8x8xbf16> to vector<1x8x8xbf16>
    %c3 = arith.constant 3 : index
    %c0_25 = arith.constant 0 : index
    %c0_26 = arith.constant 0 : index
    %c0_27 = arith.constant 0 : index
    %50 = vector.load %arg15[%c3, %c0_25, %c0_26, %c0_27] : memref<12x1x8x8xbf16, #tpu.memory_space<vmem>>, vector<1x1x8x8xbf16>
    %51 = vector.shape_cast %50 : vector<1x1x8x8xbf16> to vector<1x8x8xbf16>
    %52 = vector.shape_cast %49 : vector<1x8x8xbf16> to vector<1x1x8x8xbf16>
    tpu.vector_store %arg15[%c3, %c0_25, %c0_26, %c0_27], %52 {strides = array<i32>} : memref<12x1x8x8xbf16, #tpu.memory_space<vmem>>, vector<1x1x8x8xbf16>,
    %53 = vector.extract_strided_slice %32 {offsets = [0, 32], sizes = [8, 8], strides = [1, 1]} : vector<8x96xbf16> to vector<8x8xbf16>
    %54 = vector.shape_cast %53 : vector<8x8xbf16> to vector<1x8x8xbf16>
    %c4 = arith.constant 4 : index
    %c0_28 = arith.constant 0 : index
    %c0_29 = arith.constant 0 : index
    %c0_30 = arith.constant 0 : index
    %55 = vector.load %arg15[%c4, %c0_28, %c0_29, %c0_30] : memref<12x1x8x8xbf16, #tpu.memory_space<vmem>>, vector<1x1x8x8xbf16>
    %56 = vector.shape_cast %55 : vector<1x1x8x8xbf16> to vector<1x8x8xbf16>
    %57 = vector.shape_cast %54 : vector<1x8x8xbf16> to vector<1x1x8x8xbf16>
    tpu.vector_store %arg15[%c4, %c0_28, %c0_29, %c0_30], %57 {strides = array<i32>} : memref<12x1x8x8xbf16, #tpu.memory_space<vmem>>, vector<1x1x8x8xbf16>,
    %58 = vector.extract_strided_slice %32 {offsets = [0, 40], sizes = [8, 8], strides = [1, 1]} : vector<8x96xbf16> to vector<8x8xbf16>
    %59 = vector.shape_cast %58 : vector<8x8xbf16> to vector<1x8x8xbf16>
    %c5 = arith.constant 5 : index
    %c0_31 = arith.constant 0 : index
    %c0_32 = arith.constant 0 : index
    %c0_33 = arith.constant 0 : index
    %60 = vector.load %arg15[%c5, %c0_31, %c0_32, %c0_33] : memref<12x1x8x8xbf16, #tpu.memory_space<vmem>>, vector<1x1x8x8xbf16>
    %61 = vector.shape_cast %60 : vector<1x1x8x8xbf16> to vector<1x8x8xbf16>
    %62 = vector.shape_cast %59 : vector<1x8x8xbf16> to vector<1x1x8x8xbf16>
    tpu.vector_store %arg15[%c5, %c0_31, %c0_32, %c0_33], %62 {strides = array<i32>} : memref<12x1x8x8xbf16, #tpu.memory_space<vmem>>, vector<1x1x8x8xbf16>,
    %63 = vector.extract_strided_slice %32 {offsets = [0, 48], sizes = [8, 8], strides = [1, 1]} : vector<8x96xbf16> to vector<8x8xbf16>
    %64 = vector.shape_cast %63 : vector<8x8xbf16> to vector<1x8x8xbf16>
    %c6 = arith.constant 6 : index
    %c0_34 = arith.constant 0 : index
    %c0_35 = arith.constant 0 : index
    %c0_36 = arith.constant 0 : index
    %65 = vector.load %arg15[%c6, %c0_34, %c0_35, %c0_36] : memref<12x1x8x8xbf16, #tpu.memory_space<vmem>>, vector<1x1x8x8xbf16>
    %66 = vector.shape_cast %65 : vector<1x1x8x8xbf16> to vector<1x8x8xbf16>
    %67 = vector.shape_cast %64 : vector<1x8x8xbf16> to vector<1x1x8x8xbf16>
    tpu.vector_store %arg15[%c6, %c0_34, %c0_35, %c0_36], %67 {strides = array<i32>} : memref<12x1x8x8xbf16, #tpu.memory_space<vmem>>, vector<1x1x8x8xbf16>,
    %68 = vector.extract_strided_slice %32 {offsets = [0, 56], sizes = [8, 8], strides = [1, 1]} : vector<8x96xbf16> to vector<8x8xbf16>
    %69 = vector.shape_cast %68 : vector<8x8xbf16> to vector<1x8x8xbf16>
    %c7 = arith.constant 7 : index
    %c0_37 = arith.constant 0 : index
    %c0_38 = arith.constant 0 : index
    %c0_39 = arith.constant 0 : index
    %70 = vector.load %arg15[%c7, %c0_37, %c0_38, %c0_39] : memref<12x1x8x8xbf16, #tpu.memory_space<vmem>>, vector<1x1x8x8xbf16>
    %71 = vector.shape_cast %70 : vector<1x1x8x8xbf16> to vector<1x8x8xbf16>
    %72 = vector.shape_cast %69 : vector<1x8x8xbf16> to vector<1x1x8x8xbf16>
    tpu.vector_store %arg15[%c7, %c0_37, %c0_38, %c0_39], %72 {strides = array<i32>} : memref<12x1x8x8xbf16, #tpu.memory_space<vmem>>, vector<1x1x8x8xbf16>,
    %73 = vector.extract_strided_slice %32 {offsets = [0, 64], sizes = [8, 8], strides = [1, 1]} : vector<8x96xbf16> to vector<8x8xbf16>
    %74 = vector.shape_cast %73 : vector<8x8xbf16> to vector<1x8x8xbf16>
    %c8 = arith.constant 8 : index
    %c0_40 = arith.constant 0 : index
    %c0_41 = arith.constant 0 : index
    %c0_42 = arith.constant 0 : index
    %75 = vector.load %arg15[%c8, %c0_40, %c0_41, %c0_42] : memref<12x1x8x8xbf16, #tpu.memory_space<vmem>>, vector<1x1x8x8xbf16>
    %76 = vector.shape_cast %75 : vector<1x1x8x8xbf16> to vector<1x8x8xbf16>
    %77 = vector.shape_cast %74 : vector<1x8x8xbf16> to vector<1x1x8x8xbf16>
    tpu.vector_store %arg15[%c8, %c0_40, %c0_41, %c0_42], %77 {strides = array<i32>} : memref<12x1x8x8xbf16, #tpu.memory_space<vmem>>, vector<1x1x8x8xbf16>,
    %78 = vector.extract_strided_slice %32 {offsets = [0, 72], sizes = [8, 8], strides = [1, 1]} : vector<8x96xbf16> to vector<8x8xbf16>
    %79 = vector.shape_cast %78 : vector<8x8xbf16> to vector<1x8x8xbf16>
    %c9 = arith.constant 9 : index
    %c0_43 = arith.constant 0 : index
    %c0_44 = arith.constant 0 : index
    %c0_45 = arith.constant 0 : index
    %80 = vector.load %arg15[%c9, %c0_43, %c0_44, %c0_45] : memref<12x1x8x8xbf16, #tpu.memory_space<vmem>>, vector<1x1x8x8xbf16>
    %81 = vector.shape_cast %80 : vector<1x1x8x8xbf16> to vector<1x8x8xbf16>
    %82 = vector.shape_cast %79 : vector<1x8x8xbf16> to vector<1x1x8x8xbf16>
    tpu.vector_store %arg15[%c9, %c0_43, %c0_44, %c0_45], %82 {strides = array<i32>} : memref<12x1x8x8xbf16, #tpu.memory_space<vmem>>, vector<1x1x8x8xbf16>,
    %83 = vector.extract_strided_slice %32 {offsets = [0, 80], sizes = [8, 8], strides = [1, 1]} : vector<8x96xbf16> to vector<8x8xbf16>
    %84 = vector.shape_cast %83 : vector<8x8xbf16> to vector<1x8x8xbf16>
    %c10 = arith.constant 10 : index
    %c0_46 = arith.constant 0 : index
    %c0_47 = arith.constant 0 : index
    %c0_48 = arith.constant 0 : index
    %85 = vector.load %arg15[%c10, %c0_46, %c0_47, %c0_48] : memref<12x1x8x8xbf16, #tpu.memory_space<vmem>>, vector<1x1x8x8xbf16>
    %86 = vector.shape_cast %85 : vector<1x1x8x8xbf16> to vector<1x8x8xbf16>
    %87 = vector.shape_cast %84 : vector<1x8x8xbf16> to vector<1x1x8x8xbf16>
    tpu.vector_store %arg15[%c10, %c0_46, %c0_47, %c0_48], %87 {strides = array<i32>} : memref<12x1x8x8xbf16, #tpu.memory_space<vmem>>, vector<1x1x8x8xbf16>,
    %88 = vector.extract_strided_slice %32 {offsets = [0, 88], sizes = [8, 8], strides = [1, 1]} : vector<8x96xbf16> to vector<8x8xbf16>
    %89 = vector.shape_cast %88 : vector<8x8xbf16> to vector<1x8x8xbf16>
    %c11 = arith.constant 11 : index
    %c0_49 = arith.constant 0 : index
    %c0_50 = arith.constant 0 : index
    %c0_51 = arith.constant 0 : index
    %90 = vector.load %arg15[%c11, %c0_49, %c0_50, %c0_51] : memref<12x1x8x8xbf16, #tpu.memory_space<vmem>>, vector<1x1x8x8xbf16>
    %91 = vector.shape_cast %90 : vector<1x1x8x8xbf16> to vector<1x8x8xbf16>
    %92 = vector.shape_cast %89 : vector<1x8x8xbf16> to vector<1x1x8x8xbf16>
    tpu.vector_store %arg15[%c11, %c0_49, %c0_50, %c0_51], %92 {strides = array<i32>} : memref<12x1x8x8xbf16, #tpu.memory_space<vmem>>, vector<1x1x8x8xbf16>,
    %c0_i32 = arith.constant 0 : i32
    %c4_i32 = arith.constant 4 : i32
    %93 = arith.addi %c0_i32, %c4_i32 : i32
    %c1_i32 = arith.constant 1 : i32
    scf.for %arg18 = %c0_i32 to %93 step %c1_i32  : i32 {
      %c1_i32_119 = arith.constant 1 : i32
      %196 = arith.muli %arg18, %c1_i32_119 : i32
      %c0_i32_120 = arith.constant 0 : i32
      %197 = arith.addi %c0_i32_120, %196 : i32
      %198 = arith.index_cast %197 : i32 to index
      %c0_121 = arith.constant 0 : index
      %c0_122 = arith.constant 0 : index
      %c0_123 = arith.constant 0 : index
      %199 = vector.load %arg15[%198, %c0_121, %c0_122, %c0_123] : memref<12x1x8x8xbf16, #tpu.memory_space<vmem>>, vector<1x1x8x8xbf16>
      %200 = vector.shape_cast %199 : vector<1x1x8x8xbf16> to vector<1x8x8xbf16>
      %c4_i32_124 = arith.constant 4 : i32
      %201 = arith.addi %c4_i32_124, %197 : i32
      %202 = arith.index_cast %201 : i32 to index
      %c0_125 = arith.constant 0 : index
      %c0_126 = arith.constant 0 : index
      %c0_127 = arith.constant 0 : index
      %203 = vector.load %arg15[%202, %c0_125, %c0_126, %c0_127] : memref<12x1x8x8xbf16, #tpu.memory_space<vmem>>, vector<1x1x8x8xbf16>
      %204 = vector.shape_cast %203 : vector<1x1x8x8xbf16> to vector<1x8x8xbf16>
      %c8_i32 = arith.constant 8 : i32
      %205 = arith.addi %c8_i32, %197 : i32
      %206 = arith.index_cast %205 : i32 to index
      %c0_128 = arith.constant 0 : index
      %c0_129 = arith.constant 0 : index
      %c0_130 = arith.constant 0 : index
      %207 = vector.load %arg15[%206, %c0_128, %c0_129, %c0_130] : memref<12x1x8x8xbf16, #tpu.memory_space<vmem>>, vector<1x1x8x8xbf16>
      %208 = vector.shape_cast %207 : vector<1x1x8x8xbf16> to vector<1x8x8xbf16>
      %cst_131 = arith.constant dense<0.000000e+00> : vector<1x8x8xf32>
      %209 = tpu.matmul %200, %204, %cst_131 {dimension_numbers = #tpu.dot_dimension_numbers<[2], [2], [1], [1], [0, 0, 0, 1, 1, 1], [0], [0]>} : vector<1x8x8xbf16>, vector<1x8x8xbf16>, vector<1x8x8xf32> -> vector<1x8x8xf32>
      %cst_132 = arith.constant dense<0xFF800000> : vector<1x8xf32>
      %210 = vector.multi_reduction <maximumf>, %209, %cst_132 [2] : vector<1x8x8xf32> to vector<1x8xf32>
      %211 = vector.shape_cast %210 : vector<1x8xf32> to vector<1x8x1xf32>
      %212 = vector.broadcast %211 : vector<1x8x1xf32> to vector<1x8x8xf32>
      %213 = arith.subf %209, %212 : vector<1x8x8xf32>
      %214 = math.exp %213 : vector<1x8x8xf32>
      %cst_133 = arith.constant dense<0.000000e+00> : vector<1x8xf32>
      %215 = vector.multi_reduction <add>, %214, %cst_133 [2] : vector<1x8x8xf32> to vector<1x8xf32>
      %216 = vector.shape_cast %215 : vector<1x8xf32> to vector<1x8x1xf32>
      %217 = tpu.reciprocal %216 {approx = true} : vector<1x8x1xf32> -> vector<1x8x1xf32>
      %218 = vector.broadcast %217 : vector<1x8x1xf32> to vector<1x8x8xf32>
      %219 = arith.mulf %214, %218 : vector<1x8x8xf32>
      %220 = arith.truncf %219 : vector<1x8x8xf32> to vector<1x8x8xbf16>
      %cst_134 = arith.constant dense<0.000000e+00> : vector<1x8x8xf32>
      %221 = tpu.matmul %220, %208, %cst_134 {dimension_numbers = #tpu.dot_dimension_numbers<[2], [1], [1], [2], [0, 0, 0, 1, 1, 2], [0], [0]>} : vector<1x8x8xbf16>, vector<1x8x8xbf16>, vector<1x8x8xf32> -> vector<1x8x8xf32>
      %222 = arith.truncf %221 : vector<1x8x8xf32> to vector<1x8x8xbf16>
      %223 = arith.index_cast %197 : i32 to index
      %c0_135 = arith.constant 0 : index
      %c0_136 = arith.constant 0 : index
      %c0_137 = arith.constant 0 : index
      %224 = vector.load %arg16[%223, %c0_135, %c0_136, %c0_137] : memref<4x1x8x8xbf16, #tpu.memory_space<vmem>>, vector<1x1x8x8xbf16>
      %225 = vector.shape_cast %224 : vector<1x1x8x8xbf16> to vector<1x8x8xbf16>
      %226 = vector.shape_cast %222 : vector<1x8x8xbf16> to vector<1x1x8x8xbf16>
      tpu.vector_store %arg16[%223, %c0_135, %c0_136, %c0_137], %226 {strides = array<i32>} : memref<4x1x8x8xbf16, #tpu.memory_space<vmem>>, vector<1x1x8x8xbf16>,
    }
    %c4_i32_52 = arith.constant 4 : i32
    %c0_53 = arith.constant 0 : index
    %c0_54 = arith.constant 0 : index
    %c0_55 = arith.constant 0 : index
    %c0_56 = arith.constant 0 : index
    %94 = vector.load %arg16[%c0_53, %c0_54, %c0_55, %c0_56] : memref<4x1x8x8xbf16, #tpu.memory_space<vmem>>, vector<1x1x8x8xbf16>
    %95 = vector.shape_cast %94 : vector<1x1x8x8xbf16> to vector<1x8x8xbf16>
    %96 = vector.shape_cast %95 : vector<1x8x8xbf16> to vector<8x8xbf16>
    %c0_57 = arith.constant 0 : index
    %c0_58 = arith.constant 0 : index
    %97 = vector.load %arg17[%c0_57, %c0_58] : memref<8x32xbf16, #tpu.memory_space<vmem>>, vector<8x8xbf16>
    tpu.vector_store %arg17[%c0_57, %c0_58], %96 {strides = array<i32>} : memref<8x32xbf16, #tpu.memory_space<vmem>>, vector<8x8xbf16>,
    %c1_59 = arith.constant 1 : index
    %c0_60 = arith.constant 0 : index
    %c0_61 = arith.constant 0 : index
    %c0_62 = arith.constant 0 : index
    %98 = vector.load %arg16[%c1_59, %c0_60, %c0_61, %c0_62] : memref<4x1x8x8xbf16, #tpu.memory_space<vmem>>, vector<1x1x8x8xbf16>
    %99 = vector.shape_cast %98 : vector<1x1x8x8xbf16> to vector<1x8x8xbf16>
    %100 = vector.shape_cast %99 : vector<1x8x8xbf16> to vector<8x8xbf16>
    %c0_63 = arith.constant 0 : index
    %c8_64 = arith.constant 8 : index
    %101 = vector.load %arg17[%c0_63, %c8_64] : memref<8x32xbf16, #tpu.memory_space<vmem>>, vector<8x8xbf16>
    tpu.vector_store %arg17[%c0_63, %c8_64], %100 {strides = array<i32>} : memref<8x32xbf16, #tpu.memory_space<vmem>>, vector<8x8xbf16>,
    %c2_65 = arith.constant 2 : index
    %c0_66 = arith.constant 0 : index
    %c0_67 = arith.constant 0 : index
    %c0_68 = arith.constant 0 : index
    %102 = vector.load %arg16[%c2_65, %c0_66, %c0_67, %c0_68] : memref<4x1x8x8xbf16, #tpu.memory_space<vmem>>, vector<1x1x8x8xbf16>
    %103 = vector.shape_cast %102 : vector<1x1x8x8xbf16> to vector<1x8x8xbf16>
    %104 = vector.shape_cast %103 : vector<1x8x8xbf16> to vector<8x8xbf16>
    %c0_69 = arith.constant 0 : index
    %c16 = arith.constant 16 : index
    %105 = vector.load %arg17[%c0_69, %c16] : memref<8x32xbf16, #tpu.memory_space<vmem>>, vector<8x8xbf16>
    tpu.vector_store %arg17[%c0_69, %c16], %104 {strides = array<i32>} : memref<8x32xbf16, #tpu.memory_space<vmem>>, vector<8x8xbf16>,
    %c3_70 = arith.constant 3 : index
    %c0_71 = arith.constant 0 : index
    %c0_72 = arith.constant 0 : index
    %c0_73 = arith.constant 0 : index
    %106 = vector.load %arg16[%c3_70, %c0_71, %c0_72, %c0_73] : memref<4x1x8x8xbf16, #tpu.memory_space<vmem>>, vector<1x1x8x8xbf16>
    %107 = vector.shape_cast %106 : vector<1x1x8x8xbf16> to vector<1x8x8xbf16>
    %108 = vector.shape_cast %107 : vector<1x8x8xbf16> to vector<8x8xbf16>
    %c0_74 = arith.constant 0 : index
    %c24 = arith.constant 24 : index
    %109 = vector.load %arg17[%c0_74, %c24] : memref<8x32xbf16, #tpu.memory_space<vmem>>, vector<8x8xbf16>
    tpu.vector_store %arg17[%c0_74, %c24], %108 {strides = array<i32>} : memref<8x32xbf16, #tpu.memory_space<vmem>>, vector<8x8xbf16>,
    %c0_75 = arith.constant 0 : index
    %c0_76 = arith.constant 0 : index
    %110 = vector.load %arg17[%c0_75, %c0_76] : memref<8x32xbf16, #tpu.memory_space<vmem>>, vector<8x32xbf16>
    %c0_77 = arith.constant 0 : index
    %c0_78 = arith.constant 0 : index
    %111 = vector.load %arg6[%c0_77, %c0_78] : memref<32x32xbf16, #tpu.memory_space<vmem>>, vector<32x32xbf16>
    %cst_79 = arith.constant dense<0.000000e+00> : vector<8x32xf32>
    %112 = tpu.matmul %110, %111, %cst_79 {dimension_numbers = #tpu.dot_dimension_numbers<[1], [0], [0], [1], [0, 0, 1, 1], [], []>} : vector<8x32xbf16>, vector<32x32xbf16>, vector<8x32xf32> -> vector<8x32xf32>
    %c0_80 = arith.constant 0 : index
    %c0_81 = arith.constant 0 : index
    %113 = vector.load %arg7[%c0_80, %c0_81] : memref<1x32xf32, #tpu.memory_space<vmem>>, vector<1x32xf32>
    %114 = vector.broadcast %113 : vector<1x32xf32> to vector<8x32xf32>
    %115 = arith.addf %112, %114 : vector<8x32xf32>
    %116 = arith.addf %1, %115 : vector<8x32xf32>
    %cst_82 = arith.constant dense<0.000000e+00> : vector<8xf32>
    %117 = vector.multi_reduction <add>, %116, %cst_82 [1] : vector<8x32xf32> to vector<8xf32>
    %118 = vector.shape_cast %117 : vector<8xf32> to vector<8x1xf32>
    %cst_83 = arith.constant 3.200000e+01 : f32
    %119 = vector.broadcast %cst_83 : f32 to vector<8x1xf32>
    %120 = arith.divf %118, %119 : vector<8x1xf32>
    %121 = vector.broadcast %120 : vector<8x1xf32> to vector<8x32xf32>
    %122 = arith.subf %116, %121 : vector<8x32xf32>
    %123 = arith.mulf %122, %122 : vector<8x32xf32>
    %cst_84 = arith.constant dense<0.000000e+00> : vector<8xf32>
    %124 = vector.multi_reduction <add>, %123, %cst_84 [1] : vector<8x32xf32> to vector<8xf32>
    %125 = vector.shape_cast %124 : vector<8xf32> to vector<8x1xf32>
    %cst_85 = arith.constant 3.200000e+01 : f32
    %126 = vector.broadcast %cst_85 : f32 to vector<8x1xf32>
    %127 = arith.divf %125, %126 : vector<8x1xf32>
    %128 = vector.broadcast %120 : vector<8x1xf32> to vector<8x32xf32>
    %129 = arith.subf %116, %128 : vector<8x32xf32>
    %cst_86 = arith.constant 9.99999974E-6 : f32
    %130 = vector.broadcast %cst_86 : f32 to vector<8x1xf32>
    %131 = arith.addf %127, %130 : vector<8x1xf32>
    %132 = math.rsqrt %131 : vector<8x1xf32>
    %133 = vector.broadcast %132 : vector<8x1xf32> to vector<8x32xf32>
    %134 = arith.mulf %129, %133 : vector<8x32xf32>
    %c0_87 = arith.constant 0 : index
    %c0_88 = arith.constant 0 : index
    %135 = vector.load %arg8[%c0_87, %c0_88] : memref<1x32xf32, #tpu.memory_space<vmem>>, vector<1x32xf32>
    %136 = vector.broadcast %135 : vector<1x32xf32> to vector<8x32xf32>
    %137 = arith.mulf %134, %136 : vector<8x32xf32>
    %c0_89 = arith.constant 0 : index
    %c0_90 = arith.constant 0 : index
    %138 = vector.load %arg9[%c0_89, %c0_90] : memref<1x32xf32, #tpu.memory_space<vmem>>, vector<1x32xf32>
    %139 = vector.broadcast %138 : vector<1x32xf32> to vector<8x32xf32>
    %140 = arith.addf %137, %139 : vector<8x32xf32>
    %141 = arith.truncf %140 : vector<8x32xf32> to vector<8x32xbf16>
    %c0_91 = arith.constant 0 : index
    %c0_92 = arith.constant 0 : index
    %142 = vector.load %arg13[%c0_91, %c0_92] : memref<1x32xf32, #tpu.memory_space<vmem>>, vector<1x32xf32>
    %143 = vector.broadcast %142 : vector<1x32xf32> to vector<8x32xf32>
    %144 = arith.addf %116, %143 : vector<8x32xf32>
    %c0_93 = arith.constant 0 : index
    %c0_94 = arith.constant 0 : index
    %145 = vector.load %arg10[%c0_93, %c0_94] : memref<32x64xbf16, #tpu.memory_space<vmem>>, vector<32x64xbf16>
    %cst_95 = arith.constant dense<0.000000e+00> : vector<8x64xf32>
    %146 = tpu.matmul %141, %145, %cst_95 {dimension_numbers = #tpu.dot_dimension_numbers<[1], [0], [0], [1], [0, 0, 1, 1], [], []>} : vector<8x32xbf16>, vector<32x64xbf16>, vector<8x64xf32> -> vector<8x64xf32>
    %c0_96 = arith.constant 0 : index
    %c0_97 = arith.constant 0 : index
    %147 = vector.load %arg11[%c0_96, %c0_97] : memref<1x64xf32, #tpu.memory_space<vmem>>, vector<1x64xf32>
    %148 = vector.broadcast %147 : vector<1x64xf32> to vector<8x64xf32>
    %149 = arith.addf %146, %148 : vector<8x64xf32>
    %cst_98 = arith.constant 5.000000e-01 : f32
    %150 = vector.broadcast %cst_98 : f32 to vector<8x64xf32>
    %151 = arith.mulf %150, %149 : vector<8x64xf32>
    %cst_99 = arith.constant 0.707106769 : f32
    %152 = vector.broadcast %cst_99 : f32 to vector<8x64xf32>
    %153 = arith.mulf %149, %152 : vector<8x64xf32>
    %154 = math.absf %153 : vector<8x64xf32>
    %cst_100 = arith.constant 0.327591091 : f32
    %155 = vector.broadcast %cst_100 : f32 to vector<8x64xf32>
    %156 = arith.mulf %155, %154 : vector<8x64xf32>
    %cst_101 = arith.constant 1.000000e+00 : f32
    %157 = vector.broadcast %cst_101 : f32 to vector<8x64xf32>
    %158 = arith.addf %157, %156 : vector<8x64xf32>
    %cst_102 = arith.constant 1.000000e+00 : f32
    %159 = vector.broadcast %cst_102 : f32 to vector<8x64xf32>
    %160 = arith.divf %159, %158 : vector<8x64xf32>
    %cst_103 = arith.constant 1.06140542 : f32
    %161 = vector.broadcast %cst_103 : f32 to vector<8x64xf32>
    %162 = arith.mulf %160, %161 : vector<8x64xf32>
    %cst_104 = arith.constant -1.45315206 : f32
    %163 = vector.broadcast %cst_104 : f32 to vector<8x64xf32>
    %164 = arith.addf %163, %162 : vector<8x64xf32>
    %165 = arith.mulf %160, %164 : vector<8x64xf32>
    %cst_105 = arith.constant 1.42141378 : f32
    %166 = vector.broadcast %cst_105 : f32 to vector<8x64xf32>
    %167 = arith.addf %166, %165 : vector<8x64xf32>
    %168 = arith.mulf %160, %167 : vector<8x64xf32>
    %cst_106 = arith.constant -0.284496725 : f32
    %169 = vector.broadcast %cst_106 : f32 to vector<8x64xf32>
    %170 = arith.addf %169, %168 : vector<8x64xf32>
    %171 = arith.mulf %160, %170 : vector<8x64xf32>
    %cst_107 = arith.constant 0.254829586 : f32
    %172 = vector.broadcast %cst_107 : f32 to vector<8x64xf32>
    %173 = arith.addf %172, %171 : vector<8x64xf32>
    %174 = arith.mulf %160, %173 : vector<8x64xf32>
    %cst_108 = arith.constant 0.000000e+00 : f32
    %175 = vector.broadcast %cst_108 : f32 to vector<8x64xf32>
    %176 = arith.subf %175, %154 : vector<8x64xf32>
    %177 = arith.mulf %176, %154 : vector<8x64xf32>
    %178 = math.exp %177 : vector<8x64xf32>
    %179 = arith.mulf %174, %178 : vector<8x64xf32>
    %cst_109 = arith.constant 1.000000e+00 : f32
    %180 = vector.broadcast %cst_109 : f32 to vector<8x64xf32>
    %181 = arith.subf %180, %179 : vector<8x64xf32>
    %cst_110 = arith.constant 0.000000e+00 : f32
    %182 = vector.broadcast %cst_110 : f32 to vector<8x64xf32>
    %183 = arith.cmpf olt, %153, %182 : vector<8x64xf32>
    %cst_111 = arith.constant 0.000000e+00 : f32
    %184 = vector.broadcast %cst_111 : f32 to vector<8x64xf32>
    %185 = arith.subf %184, %181 : vector<8x64xf32>
    %186 = arith.select %183, %185, %181 : vector<8x64xi1>, vector<8x64xf32>
    %cst_112 = arith.constant 1.000000e+00 : f32
    %187 = vector.broadcast %cst_112 : f32 to vector<8x64xf32>
    %188 = arith.addf %187, %186 : vector<8x64xf32>
    %189 = arith.mulf %151, %188 : vector<8x64xf32>
    %190 = arith.truncf %189 : vector<8x64xf32> to vector<8x64xbf16>
    %c0_113 = arith.constant 0 : index
    %c0_114 = arith.constant 0 : index
    %191 = vector.load %arg12[%c0_113, %c0_114] : memref<64x32xbf16, #tpu.memory_space<vmem>>, vector<64x32xbf16>
    %cst_115 = arith.constant dense<0.000000e+00> : vector<8x32xf32>
    %192 = tpu.matmul %190, %191, %cst_115 {dimension_numbers = #tpu.dot_dimension_numbers<[1], [0], [0], [1], [0, 0, 1, 1], [], []>} : vector<8x64xbf16>, vector<64x32xbf16>, vector<8x32xf32> -> vector<8x32xf32>
    %193 = arith.addf %144, %192 : vector<8x32xf32>
    %194 = vector.shape_cast %193 : vector<8x32xf32> to vector<1x8x32xf32>
    %c0_116 = arith.constant 0 : index
    %c0_117 = arith.constant 0 : index
    %c0_118 = arith.constant 0 : index
    %195 = vector.load %arg14[%c0_116, %c0_117, %c0_118] : memref<1x8x32xf32, #tpu.memory_space<vmem>>, vector<1x8x32xf32>
    tpu.vector_store %arg14[%c0_116, %c0_117, %c0_118], %194 {strides = array<i32>} : memref<1x8x32xf32, #tpu.memory_space<vmem>>, vector<1x8x32xf32>,
    return
  }
  func.func @transform_0(%arg0: i32) -> (i32, i32, i32) {
    %c0_i32 = arith.constant 0 : i32
    %c0_i32_0 = arith.constant 0 : i32
    %c0_i32_1 = arith.constant 0 : i32
    return %arg0, %c0_i32, %c0_i32_0 : i32, i32, i32
  }
  func.func @transform_1(%arg0: i32) -> (i32, i32) {
    %c0_i32 = arith.constant 0 : i32
    %c0_i32_0 = arith.constant 0 : i32
    %c0_i32_1 = arith.constant 0 : i32
    return %c0_i32, %c0_i32_0 : i32, i32
  }
  func.func @transform_2(%arg0: i32) -> (i32, i32) {
    %c0_i32 = arith.constant 0 : i32
    %c0_i32_0 = arith.constant 0 : i32
    %c0_i32_1 = arith.constant 0 : i32
    return %c0_i32, %c0_i32_0 : i32, i32
  }
  func.func @transform_3(%arg0: i32) -> (i32, i32) {
    %c0_i32 = arith.constant 0 : i32
    %c0_i32_0 = arith.constant 0 : i32
    %c0_i32_1 = arith.constant 0 : i32
    return %c0_i32, %c0_i32_0 : i32, i32
  }
  func.func @transform_4(%arg0: i32) -> (i32, i32) {
    %c0_i32 = arith.constant 0 : i32
    %c0_i32_0 = arith.constant 0 : i32
    %c0_i32_1 = arith.constant 0 : i32
    return %c0_i32, %c0_i32_0 : i32, i32
  }
  func.func @transform_5(%arg0: i32) -> (i32, i32) {
    %c0_i32 = arith.constant 0 : i32
    %c0_i32_0 = arith.constant 0 : i32
    %c0_i32_1 = arith.constant 0 : i32
    return %c0_i32, %c0_i32_0 : i32, i32
  }
  func.func @transform_6(%arg0: i32) -> (i32, i32) {
    %c0_i32 = arith.constant 0 : i32
    %c0_i32_0 = arith.constant 0 : i32
    %c0_i32_1 = arith.constant 0 : i32
    return %c0_i32, %c0_i32_0 : i32, i32
  }
  func.func @transform_7(%arg0: i32) -> (i32, i32) {
    %c0_i32 = arith.constant 0 : i32
    %c0_i32_0 = arith.constant 0 : i32
    %c0_i32_1 = arith.constant 0 : i32
    return %c0_i32, %c0_i32_0 : i32, i32
  }
  func.func @transform_8(%arg0: i32) -> (i32, i32) {
    %c0_i32 = arith.constant 0 : i32
    %c0_i32_0 = arith.constant 0 : i32
    %c0_i32_1 = arith.constant 0 : i32
    return %c0_i32, %c0_i32_0 : i32, i32
  }
  func.func @transform_9(%arg0: i32) -> (i32, i32) {
    %c0_i32 = arith.constant 0 : i32
    %c0_i32_0 = arith.constant 0 : i32
    %c0_i32_1 = arith.constant 0 : i32
    return %c0_i32, %c0_i32_0 : i32, i32
  }
  func.func @transform_10(%arg0: i32) -> (i32, i32) {
    %c0_i32 = arith.constant 0 : i32
    %c0_i32_0 = arith.constant 0 : i32
    %c0_i32_1 = arith.constant 0 : i32
    return %c0_i32, %c0_i32_0 : i32, i32
  }
  func.func @transform_11(%arg0: i32) -> (i32, i32) {
    %c0_i32 = arith.constant 0 : i32
    %c0_i32_0 = arith.constant 0 : i32
    %c0_i32_1 = arith.constant 0 : i32
    return %c0_i32, %c0_i32_0 : i32, i32
  }
  func.func @transform_12(%arg0: i32) -> (i32, i32) {
    %c0_i32 = arith.constant 0 : i32
    %c0_i32_0 = arith.constant 0 : i32
    %c0_i32_1 = arith.constant 0 : i32
    return %c0_i32, %c0_i32_0 : i32, i32
  }
  func.func @transform_13(%arg0: i32) -> (i32, i32, i32) {
    %c0_i32 = arith.constant 0 : i32
    %c0_i32_0 = arith.constant 0 : i32
    %c0_i32_1 = arith.constant 0 : i32
    return %arg0, %c0_i32, %c0_i32_0 : i32, i32, i32
  }
}

module attributes {stable_mosaic.version = 11 : i64} {
  func.func @block_kernel(%arg0: i32, %arg1: memref<1x8x32xf32, #tpu.memory_space<vmem>>, %arg2: memref<1x32xf32, #tpu.memory_space<vmem>>, %arg3: memref<1x32xf32, #tpu.memory_space<vmem>>, %arg4: memref<32x96xbf16, #tpu.memory_space<vmem>>, %arg5: memref<1x96xf32, #tpu.memory_space<vmem>>, %arg6: memref<32x32xbf16, #tpu.memory_space<vmem>>, %arg7: memref<1x32xf32, #tpu.memory_space<vmem>>, %arg8: memref<1x32xf32, #tpu.memory_space<vmem>>, %arg9: memref<1x32xf32, #tpu.memory_space<vmem>>, %arg10: memref<32x64xbf16, #tpu.memory_space<vmem>>, %arg11: memref<1x64xf32, #tpu.memory_space<vmem>>, %arg12: memref<64x32xbf16, #tpu.memory_space<vmem>>, %arg13: memref<1x32xf32, #tpu.memory_space<vmem>>, %arg14: memref<1x8x32xf32, #tpu.memory_space<vmem>>, %arg15: memref<12x1x8x8xbf16, #tpu.memory_space<vmem>>, %arg16: memref<4x1x8x8xbf16, #tpu.memory_space<vmem>>, %arg17: memref<8x32xbf16, #tpu.memory_space<vmem>>) attributes {dimension_semantics = [#tpu.dimension_semantics<parallel>], iteration_bounds = array<i64: 2>, scalar_prefetch = 0 : i64, scratch_operands = 3 : i64, tpu.core_type = #tpu.core_type<tc>, window_params = [{transform_indices = @transform_0, window_bounds = array<i64: 1, 8, 32>}, {pipeline_mode = #tpu.pipeline_mode<synchronous>, transform_indices = @transform_1, window_bounds = array<i64: 1, 32>}, {pipeline_mode = #tpu.pipeline_mode<synchronous>, transform_indices = @transform_2, window_bounds = array<i64: 1, 32>}, {pipeline_mode = #tpu.pipeline_mode<synchronous>, transform_indices = @transform_3, window_bounds = array<i64: 32, 96>}, {pipeline_mode = #tpu.pipeline_mode<synchronous>, transform_indices = @transform_4, window_bounds = array<i64: 1, 96>}, {pipeline_mode = #tpu.pipeline_mode<synchronous>, transform_indices = @transform_5, window_bounds = array<i64: 32, 32>}, {pipeline_mode = #tpu.pipeline_mode<synchronous>, transform_indices = @transform_6, window_bounds = array<i64: 1, 32>}, {pipeline_mode = #tpu.pipeline_mode<synchronous>, transform_indices = @transform_7, window_bounds = array<i64: 1, 32>}, {pipeline_mode = #tpu.pipeline_mode<synchronous>, transform_indices = @transform_8, window_bounds = array<i64: 1, 32>}, {pipeline_mode = #tpu.pipeline_mode<synchronous>, transform_indices = @transform_9, window_bounds = array<i64: 32, 64>}, {pipeline_mode = #tpu.pipeline_mode<synchronous>, transform_indices = @transform_10, window_bounds = array<i64: 1, 64>}, {pipeline_mode = #tpu.pipeline_mode<synchronous>, transform_indices = @transform_11, window_bounds = array<i64: 64, 32>}, {pipeline_mode = #tpu.pipeline_mode<synchronous>, transform_indices = @transform_12, window_bounds = array<i64: 1, 32>}, {transform_indices = @transform_13, window_bounds = array<i64: 1, 8, 32>}]} {
    %c0 = arith.constant 0 : index
    %c0_0 = arith.constant 0 : index
    %c0_1 = arith.constant 0 : index
    %0 = vector.load %arg1[%c0, %c0_0, %c0_1] : memref<1x8x32xf32, #tpu.memory_space<vmem>>, vector<1x8x32xf32>
    %1 = vector.shape_cast %0 : vector<1x8x32xf32> to vector<8x32xf32>
    %cst = arith.constant dense<0.000000e+00> : vector<8xf32>
    %2 = vector.multi_reduction <add>, %1, %cst [1] : vector<8x32xf32> to vector<8xf32>
    %3 = vector.shape_cast %2 : vector<8xf32> to vector<8x1xf32>
    %cst_2 = arith.constant 3.200000e+01 : f32
    %4 = vector.broadcast %cst_2 : f32 to vector<8x1xf32>
    %5 = arith.divf %3, %4 : vector<8x1xf32>
    %6 = vector.broadcast %5 : vector<8x1xf32> to vector<8x32xf32>
    %7 = arith.subf %1, %6 : vector<8x32xf32>
    %8 = arith.mulf %7, %7 : vector<8x32xf32>
    %cst_3 = arith.constant dense<0.000000e+00> : vector<8xf32>
    %9 = vector.multi_reduction <add>, %8, %cst_3 [1] : vector<8x32xf32> to vector<8xf32>
    %10 = vector.shape_cast %9 : vector<8xf32> to vector<8x1xf32>
    %cst_4 = arith.constant 3.200000e+01 : f32
    %11 = vector.broadcast %cst_4 : f32 to vector<8x1xf32>
    %12 = arith.divf %10, %11 : vector<8x1xf32>
    %13 = vector.broadcast %5 : vector<8x1xf32> to vector<8x32xf32>
    %14 = arith.subf %1, %13 : vector<8x32xf32>
    %cst_5 = arith.constant 9.99999974E-6 : f32
    %15 = vector.broadcast %cst_5 : f32 to vector<8x1xf32>
    %16 = arith.addf %12, %15 : vector<8x1xf32>
    %17 = math.rsqrt %16 : vector<8x1xf32>
    %18 = vector.broadcast %17 : vector<8x1xf32> to vector<8x32xf32>
    %19 = arith.mulf %14, %18 : vector<8x32xf32>
    %c0_6 = arith.constant 0 : index
    %c0_7 = arith.constant 0 : index
    %20 = vector.load %arg2[%c0_6, %c0_7] : memref<1x32xf32, #tpu.memory_space<vmem>>, vector<1x32xf32>
    %21 = vector.broadcast %20 : vector<1x32xf32> to vector<8x32xf32>
    %22 = arith.mulf %19, %21 : vector<8x32xf32>
    %c0_8 = arith.constant 0 : index
    %c0_9 = arith.constant 0 : index
    %23 = vector.load %arg3[%c0_8, %c0_9] : memref<1x32xf32, #tpu.memory_space<vmem>>, vector<1x32xf32>
    %24 = vector.broadcast %23 : vector<1x32xf32> to vector<8x32xf32>
    %25 = arith.addf %22, %24 : vector<8x32xf32>
    %26 = arith.truncf %25 : vector<8x32xf32> to vector<8x32xbf16>
    %c0_10 = arith.constant 0 : index
    %c0_11 = arith.constant 0 : index
    %27 = vector.load %arg4[%c0_10, %c0_11] : memref<32x96xbf16, #tpu.memory_space<vmem>>, vector<32x96xbf16>
    %cst_12 = arith.constant dense<0.000000e+00> : vector<8x96xf32>
    %28 = tpu.matmul %26, %27, %cst_12 {dimension_numbers = #tpu.dot_dimension_numbers<[1], [0], [0], [1], [0, 0, 1, 1], [], []>} : vector<8x32xbf16>, vector<32x96xbf16>, vector<8x96xf32> -> vector<8x96xf32>
    %c0_13 = arith.constant 0 : index
    %c0_14 = arith.constant 0 : index
    %29 = vector.load %arg5[%c0_13, %c0_14] : memref<1x96xf32, #tpu.memory_space<vmem>>, vector<1x96xf32>
    %30 = vector.broadcast %29 : vector<1x96xf32> to vector<8x96xf32>
    %31 = arith.addf %28, %30 : vector<8x96xf32>
    %32 = arith.truncf %31 : vector<8x96xf32> to vector<8x96xbf16>
    %33 = vector.extract_strided_slice %32 {offsets = [0, 0], sizes = [8, 8], strides = [1, 1]} : vector<8x96xbf16> to vector<8x8xbf16>
    %34 = vector.shape_cast %33 : vector<8x8xbf16> to vector<1x8x8xbf16>
    %c0_15 = arith.constant 0 : index
    %c0_16 = arith.constant 0 : index
    %c0_17 = arith.constant 0 : index
    %c0_18 = arith.constant 0 : index
    %35 = vector.load %arg15[%c0_15, %c0_16, %c0_17, %c0_18] : memref<12x1x8x8xbf16, #tpu.memory_space<vmem>>, vector<1x1x8x8xbf16>
    %36 = vector.shape_cast %35 : vector<1x1x8x8xbf16> to vector<1x8x8xbf16>
    %37 = vector.shape_cast %34 : vector<1x8x8xbf16> to vector<1x1x8x8xbf16>
    tpu.vector_store %arg15[%c0_15, %c0_16, %c0_17, %c0_18], %37 {strides = array<i32>} : memref<12x1x8x8xbf16, #tpu.memory_space<vmem>>, vector<1x1x8x8xbf16>,
    %38 = vector.extract_strided_slice %32 {offsets = [0, 8], sizes = [8, 8], strides = [1, 1]} : vector<8x96xbf16> to vector<8x8xbf16>
    %39 = vector.shape_cast %38 : vector<8x8xbf16> to vector<1x8x8xbf16>
    %c1 = arith.constant 1 : index
    %c0_19 = arith.constant 0 : index
    %c0_20 = arith.constant 0 : index
    %c0_21 = arith.constant 0 : index
    %40 = vector.load %arg15[%c1, %c0_19, %c0_20, %c0_21] : memref<12x1x8x8xbf16, #tpu.memory_space<vmem>>, vector<1x1x8x8xbf16>
    %41 = vector.shape_cast %40 : vector<1x1x8x8xbf16> to vector<1x8x8xbf16>
    %42 = vector.shape_cast %39 : vector<1x8x8xbf16> to vector<1x1x8x8xbf16>
    tpu.vector_store %arg15[%c1, %c0_19, %c0_20, %c0_21], %42 {strides = array<i32>} : memref<12x1x8x8xbf16, #tpu.memory_space<vmem>>, vector<1x1x8x8xbf16>,
    %43 = vector.extract_strided_slice %32 {offsets = [0, 16], sizes = [8, 8], strides = [1, 1]} : vector<8x96xbf16> to vector<8x8xbf16>
    %44 = vector.shape_cast %43 : vector<8x8xbf16> to vector<1x8x8xbf16>
    %c2 = arith.constant 2 : index
    %c0_22 = arith.constant 0 : index
    %c0_23 = arith.constant 0 : index
    %c0_24 = arith.constant 0 : index
    %45 = vector.load %arg15[%c2, %c0_22, %c0_23, %c0_24] : memref<12x1x8x8xbf16, #tpu.memory_space<vmem>>, vector<1x1x8x8xbf16>
    %46 = vector.shape_cast %45 : vector<1x1x8x8xbf16> to vector<1x8x8xbf16>
    %47 = vector.shape_cast %44 : vector<1x8x8xbf16> to vector<1x1x8x8xbf16>
    tpu.vector_store %arg15[%c2, %c0_22, %c0_23, %c0_24], %47 {strides = array<i32>} : memref<12x1x8x8xbf16, #tpu.memory_space<vmem>>, vector<1x1x8x8xbf16>,
    %48 = vector.extract_strided_slice %32 {offsets = [0, 24], sizes = [8, 8], strides = [1, 1]} : vector<8x96xbf16> to vector<8x8xbf16>
    %49 = vector.shape_cast %48 : vector<8x8xbf16> to vector<1x8x8xbf16>
    %c3 = arith.constant 3 : index
    %c0_25 = arith.constant 0 : index
    %c0_26 = arith.constant 0 : index
    %c0_27 = arith.constant 0 : index
    %50 = vector.load %arg15[%c3, %c0_25, %c0_26, %c0_27] : memref<12x1x8x8xbf16, #tpu.memory_space<vmem>>, vector<1x1x8x8xbf16>
    %51 = vector.shape_cast %50 : vector<1x1x8x8xbf16> to vector<1x8x8xbf16>
    %52 = vector.shape_cast %49 : vector<1x8x8xbf16> to vector<1x1x8x8xbf16>
    tpu.vector_store %arg15[%c3, %c0_25, %c0_26, %c0_27], %52 {strides = array<i32>} : memref<12x1x8x8xbf16, #tpu.memory_space<vmem>>, vector<1x1x8x8xbf16>,
    %53 = vector.extract_strided_slice %32 {offsets = [0, 32], sizes = [8, 8], strides = [1, 1]} : vector<8x96xbf16> to vector<8x8xbf16>
    %54 = vector.shape_cast %53 : vector<8x8xbf16> to vector<1x8x8xbf16>
    %c4 = arith.constant 4 : index
    %c0_28 = arith.constant 0 : index
    %c0_29 = arith.constant 0 : index
    %c0_30 = arith.constant 0 : index
    %55 = vector.load %arg15[%c4, %c0_28, %c0_29, %c0_30] : memref<12x1x8x8xbf16, #tpu.memory_space<vmem>>, vector<1x1x8x8xbf16>
    %56 = vector.shape_cast %55 : vector<1x1x8x8xbf16> to vector<1x8x8xbf16>
    %57 = vector.shape_cast %54 : vector<1x8x8xbf16> to vector<1x1x8x8xbf16>
    tpu.vector_store %arg15[%c4, %c0_28, %c0_29, %c0_30], %57 {strides = array<i32>} : memref<12x1x8x8xbf16, #tpu.memory_space<vmem>>, vector<1x1x8x8xbf16>,
    %58 = vector.extract_strided_slice %32 {offsets = [0, 40], sizes = [8, 8], strides = [1, 1]} : vector<8x96xbf16> to vector<8x8xbf16>
    %59 = vector.shape_cast %58 : vector<8x8xbf16> to vector<1x8x8xbf16>
    %c5 = arith.constant 5 : index
    %c0_31 = arith.constant 0 : index
    %c0_32 = arith.constant 0 : index
    %c0_33 = arith.constant 0 : index
    %60 = vector.load %arg15[%c5, %c0_31, %c0_32, %c0_33] : memref<12x1x8x8xbf16, #tpu.memory_space<vmem>>, vector<1x1x8x8xbf16>
    %61 = vector.shape_cast %60 : vector<1x1x8x8xbf16> to vector<1x8x8xbf16>
    %62 = vector.shape_cast %59 : vector<1x8x8xbf16> to vector<1x1x8x8xbf16>
    tpu.vector_store %arg15[%c5, %c0_31, %c0_32, %c0_33], %62 {strides = array<i32>} : memref<12x1x8x8xbf16, #tpu.memory_space<vmem>>, vector<1x1x8x8xbf16>,
    %63 = vector.extract_strided_slice %32 {offsets = [0, 48], sizes = [8, 8], strides = [1, 1]} : vector<8x96xbf16> to vector<8x8xbf16>
    %64 = vector.shape_cast %63 : vector<8x8xbf16> to vector<1x8x8xbf16>
    %c6 = arith.constant 6 : index
    %c0_34 = arith.constant 0 : index
    %c0_35 = arith.constant 0 : index
    %c0_36 = arith.constant 0 : index
    %65 = vector.load %arg15[%c6, %c0_34, %c0_35, %c0_36] : memref<12x1x8x8xbf16, #tpu.memory_space<vmem>>, vector<1x1x8x8xbf16>
    %66 = vector.shape_cast %65 : vector<1x1x8x8xbf16> to vector<1x8x8xbf16>
    %67 = vector.shape_cast %64 : vector<1x8x8xbf16> to vector<1x1x8x8xbf16>
    tpu.vector_store %arg15[%c6, %c0_34, %c0_35, %c0_36], %67 {strides = array<i32>} : memref<12x1x8x8xbf16, #tpu.memory_space<vmem>>, vector<1x1x8x8xbf16>,
    %68 = vector.extract_strided_slice %32 {offsets = [0, 56], sizes = [8, 8], strides = [1, 1]} : vector<8x96xbf16> to vector<8x8xbf16>
    %69 = vector.shape_cast %68 : vector<8x8xbf16> to vector<1x8x8xbf16>
    %c7 = arith.constant 7 : index
    %c0_37 = arith.constant 0 : index
    %c0_38 = arith.constant 0 : index
    %c0_39 = arith.constant 0 : index
    %70 = vector.load %arg15[%c7, %c0_37, %c0_38, %c0_39] : memref<12x1x8x8xbf16, #tpu.memory_space<vmem>>, vector<1x1x8x8xbf16>
    %71 = vector.shape_cast %70 : vector<1x1x8x8xbf16> to vector<1x8x8xbf16>
    %72 = vector.shape_cast %69 : vector<1x8x8xbf16> to vector<1x1x8x8xbf16>
    tpu.vector_store %arg15[%c7, %c0_37, %c0_38, %c0_39], %72 {strides = array<i32>} : memref<12x1x8x8xbf16, #tpu.memory_space<vmem>>, vector<1x1x8x8xbf16>,
    %73 = vector.extract_strided_slice %32 {offsets = [0, 64], sizes = [8, 8], strides = [1, 1]} : vector<8x96xbf16> to vector<8x8xbf16>
    %74 = vector.shape_cast %73 : vector<8x8xbf16> to vector<1x8x8xbf16>
    %c8 = arith.constant 8 : index
    %c0_40 = arith.constant 0 : index
    %c0_41 = arith.constant 0 : index
    %c0_42 = arith.constant 0 : index
    %75 = vector.load %arg15[%c8, %c0_40, %c0_41, %c0_42] : memref<12x1x8x8xbf16, #tpu.memory_space<vmem>>, vector<1x1x8x8xbf16>
    %76 = vector.shape_cast %75 : vector<1x1x8x8xbf16> to vector<1x8x8xbf16>
    %77 = vector.shape_cast %74 : vector<1x8x8xbf16> to vector<1x1x8x8xbf16>
    tpu.vector_store %arg15[%c8, %c0_40, %c0_41, %c0_42], %77 {strides = array<i32>} : memref<12x1x8x8xbf16, #tpu.memory_space<vmem>>, vector<1x1x8x8xbf16>,
    %78 = vector.extract_strided_slice %32 {offsets = [0, 72], sizes = [8, 8], strides = [1, 1]} : vector<8x96xbf16> to vector<8x8xbf16>
    %79 = vector.shape_cast %78 : vector<8x8xbf16> to vector<1x8x8xbf16>
    %c9 = arith.constant 9 : index
    %c0_43 = arith.constant 0 : index
    %c0_44 = arith.constant 0 : index
    %c0_45 = arith.constant 0 : index
    %80 = vector.load %arg15[%c9, %c0_43, %c0_44, %c0_45] : memref<12x1x8x8xbf16, #tpu.memory_space<vmem>>, vector<1x1x8x8xbf16>
    %81 = vector.shape_cast %80 : vector<1x1x8x8xbf16> to vector<1x8x8xbf16>
    %82 = vector.shape_cast %79 : vector<1x8x8xbf16> to vector<1x1x8x8xbf16>
    tpu.vector_store %arg15[%c9, %c0_43, %c0_44, %c0_45], %82 {strides = array<i32>} : memref<12x1x8x8xbf16, #tpu.memory_space<vmem>>, vector<1x1x8x8xbf16>,
    %83 = vector.extract_strided_slice %32 {offsets = [0, 80], sizes = [8, 8], strides = [1, 1]} : vector<8x96xbf16> to vector<8x8xbf16>
    %84 = vector.shape_cast %83 : vector<8x8xbf16> to vector<1x8x8xbf16>
    %c10 = arith.constant 10 : index
    %c0_46 = arith.constant 0 : index
    %c0_47 = arith.constant 0 : index
    %c0_48 = arith.constant 0 : index
    %85 = vector.load %arg15[%c10, %c0_46, %c0_47, %c0_48] : memref<12x1x8x8xbf16, #tpu.memory_space<vmem>>, vector<1x1x8x8xbf16>
    %86 = vector.shape_cast %85 : vector<1x1x8x8xbf16> to vector<1x8x8xbf16>
    %87 = vector.shape_cast %84 : vector<1x8x8xbf16> to vector<1x1x8x8xbf16>
    tpu.vector_store %arg15[%c10, %c0_46, %c0_47, %c0_48], %87 {strides = array<i32>} : memref<12x1x8x8xbf16, #tpu.memory_space<vmem>>, vector<1x1x8x8xbf16>,
    %88 = vector.extract_strided_slice %32 {offsets = [0, 88], sizes = [8, 8], strides = [1, 1]} : vector<8x96xbf16> to vector<8x8xbf16>
    %89 = vector.shape_cast %88 : vector<8x8xbf16> to vector<1x8x8xbf16>
    %c11 = arith.constant 11 : index
    %c0_49 = arith.constant 0 : index
    %c0_50 = arith.constant 0 : index
    %c0_51 = arith.constant 0 : index
    %90 = vector.load %arg15[%c11, %c0_49, %c0_50, %c0_51] : memref<12x1x8x8xbf16, #tpu.memory_space<vmem>>, vector<1x1x8x8xbf16>
    %91 = vector.shape_cast %90 : vector<1x1x8x8xbf16> to vector<1x8x8xbf16>
    %92 = vector.shape_cast %89 : vector<1x8x8xbf16> to vector<1x1x8x8xbf16>
    tpu.vector_store %arg15[%c11, %c0_49, %c0_50, %c0_51], %92 {strides = array<i32>} : memref<12x1x8x8xbf16, #tpu.memory_space<vmem>>, vector<1x1x8x8xbf16>,
    %c0_i32 = arith.constant 0 : i32
    %c4_i32 = arith.constant 4 : i32
    %93 = arith.addi %c0_i32, %c4_i32 : i32
    %c1_i32 = arith.constant 1 : i32
    scf.for %arg18 = %c0_i32 to %93 step %c1_i32  : i32 {
      %c1_i32_119 = arith.constant 1 : i32
      %196 = arith.muli %arg18, %c1_i32_119 : i32
      %c0_i32_120 = arith.constant 0 : i32
      %197 = arith.addi %c0_i32_120, %196 : i32
      %198 = arith.index_cast %197 : i32 to index
      %c0_121 = arith.constant 0 : index
      %c0_122 = arith.constant 0 : index
      %c0_123 = arith.constant 0 : index
      %199 = vector.load %arg15[%198, %c0_121, %c0_122, %c0_123] : memref<12x1x8x8xbf16, #tpu.memory_space<vmem>>, vector<1x1x8x8xbf16>
      %200 = vector.shape_cast %199 : vector<1x1x8x8xbf16> to vector<1x8x8xbf16>
      %c4_i32_124 = arith.constant 4 : i32
      %201 = arith.addi %c4_i32_124, %197 : i32
      %202 = arith.index_cast %201 : i32 to index
      %c0_125 = arith.constant 0 : index
      %c0_126 = arith.constant 0 : index
      %c0_127 = arith.constant 0 : index
      %203 = vector.load %arg15[%202, %c0_125, %c0_126, %c0_127] : memref<12x1x8x8xbf16, #tpu.memory_space<vmem>>, vector<1x1x8x8xbf16>
      %204 = vector.shape_cast %203 : vector<1x1x8x8xbf16> to vector<1x8x8xbf16>
      %c8_i32 = arith.constant 8 : i32
      %205 = arith.addi %c8_i32, %197 : i32
      %206 = arith.index_cast %205 : i32 to index
      %c0_128 = arith.constant 0 : index
      %c0_129 = arith.constant 0 : index
      %c0_130 = arith.constant 0 : index
      %207 = vector.load %arg15[%206, %c0_128, %c0_129, %c0_130] : memref<12x1x8x8xbf16, #tpu.memory_space<vmem>>, vector<1x1x8x8xbf16>
      %208 = vector.shape_cast %207 : vector<1x1x8x8xbf16> to vector<1x8x8xbf16>
      %cst_131 = arith.constant dense<0.000000e+00> : vector<1x8x8xf32>
      %209 = tpu.matmul %200, %204, %cst_131 {dimension_numbers = #tpu.dot_dimension_numbers<[2], [2], [1], [1], [0, 0, 0, 1, 1, 1], [0], [0]>} : vector<1x8x8xbf16>, vector<1x8x8xbf16>, vector<1x8x8xf32> -> vector<1x8x8xf32>
      %cst_132 = arith.constant dense<0xFF800000> : vector<1x8xf32>
      %210 = vector.multi_reduction <maximumf>, %209, %cst_132 [2] : vector<1x8x8xf32> to vector<1x8xf32>
      %211 = vector.shape_cast %210 : vector<1x8xf32> to vector<1x8x1xf32>
      %212 = vector.broadcast %211 : vector<1x8x1xf32> to vector<1x8x8xf32>
      %213 = arith.subf %209, %212 : vector<1x8x8xf32>
      %214 = math.exp %213 : vector<1x8x8xf32>
      %cst_133 = arith.constant dense<0.000000e+00> : vector<1x8xf32>
      %215 = vector.multi_reduction <add>, %214, %cst_133 [2] : vector<1x8x8xf32> to vector<1x8xf32>
      %216 = vector.shape_cast %215 : vector<1x8xf32> to vector<1x8x1xf32>
      %217 = tpu.reciprocal %216 {approx = true} : vector<1x8x1xf32> -> vector<1x8x1xf32>
      %218 = vector.broadcast %217 : vector<1x8x1xf32> to vector<1x8x8xf32>
      %219 = arith.mulf %214, %218 : vector<1x8x8xf32>
      %220 = arith.truncf %219 : vector<1x8x8xf32> to vector<1x8x8xbf16>
      %cst_134 = arith.constant dense<0.000000e+00> : vector<1x8x8xf32>
      %221 = tpu.matmul %220, %208, %cst_134 {dimension_numbers = #tpu.dot_dimension_numbers<[2], [1], [1], [2], [0, 0, 0, 1, 1, 2], [0], [0]>} : vector<1x8x8xbf16>, vector<1x8x8xbf16>, vector<1x8x8xf32> -> vector<1x8x8xf32>
      %222 = arith.truncf %221 : vector<1x8x8xf32> to vector<1x8x8xbf16>
      %223 = arith.index_cast %197 : i32 to index
      %c0_135 = arith.constant 0 : index
      %c0_136 = arith.constant 0 : index
      %c0_137 = arith.constant 0 : index
      %224 = vector.load %arg16[%223, %c0_135, %c0_136, %c0_137] : memref<4x1x8x8xbf16, #tpu.memory_space<vmem>>, vector<1x1x8x8xbf16>
      %225 = vector.shape_cast %224 : vector<1x1x8x8xbf16> to vector<1x8x8xbf16>
      %226 = vector.shape_cast %222 : vector<1x8x8xbf16> to vector<1x1x8x8xbf16>
      tpu.vector_store %arg16[%223, %c0_135, %c0_136, %c0_137], %226 {strides = array<i32>} : memref<4x1x8x8xbf16, #tpu.memory_space<vmem>>, vector<1x1x8x8xbf16>,
    }
    %c4_i32_52 = arith.constant 4 : i32
    %c0_53 = arith.constant 0 : index
    %c0_54 = arith.constant 0 : index
    %c0_55 = arith.constant 0 : index
    %c0_56 = arith.constant 0 : index
    %94 = vector.load %arg16[%c0_53, %c0_54, %c0_55, %c0_56] : memref<4x1x8x8xbf16, #tpu.memory_space<vmem>>, vector<1x1x8x8xbf16>
    %95 = vector.shape_cast %94 : vector<1x1x8x8xbf16> to vector<1x8x8xbf16>
    %96 = vector.shape_cast %95 : vector<1x8x8xbf16> to vector<8x8xbf16>
    %c0_57 = arith.constant 0 : index
    %c0_58 = arith.constant 0 : index
    %97 = vector.load %arg17[%c0_57, %c0_58] : memref<8x32xbf16, #tpu.memory_space<vmem>>, vector<8x8xbf16>
    tpu.vector_store %arg17[%c0_57, %c0_58], %96 {strides = array<i32>} : memref<8x32xbf16, #tpu.memory_space<vmem>>, vector<8x8xbf16>,
    %c1_59 = arith.constant 1 : index
    %c0_60 = arith.constant 0 : index
    %c0_61 = arith.constant 0 : index
    %c0_62 = arith.constant 0 : index
    %98 = vector.load %arg16[%c1_59, %c0_60, %c0_61, %c0_62] : memref<4x1x8x8xbf16, #tpu.memory_space<vmem>>, vector<1x1x8x8xbf16>
    %99 = vector.shape_cast %98 : vector<1x1x8x8xbf16> to vector<1x8x8xbf16>
    %100 = vector.shape_cast %99 : vector<1x8x8xbf16> to vector<8x8xbf16>
    %c0_63 = arith.constant 0 : index
    %c8_64 = arith.constant 8 : index
    %101 = vector.load %arg17[%c0_63, %c8_64] : memref<8x32xbf16, #tpu.memory_space<vmem>>, vector<8x8xbf16>
    tpu.vector_store %arg17[%c0_63, %c8_64], %100 {strides = array<i32>} : memref<8x32xbf16, #tpu.memory_space<vmem>>, vector<8x8xbf16>,
    %c2_65 = arith.constant 2 : index
    %c0_66 = arith.constant 0 : index
    %c0_67 = arith.constant 0 : index
    %c0_68 = arith.constant 0 : index
    %102 = vector.load %arg16[%c2_65, %c0_66, %c0_67, %c0_68] : memref<4x1x8x8xbf16, #tpu.memory_space<vmem>>, vector<1x1x8x8xbf16>
    %103 = vector.shape_cast %102 : vector<1x1x8x8xbf16> to vector<1x8x8xbf16>
    %104 = vector.shape_cast %103 : vector<1x8x8xbf16> to vector<8x8xbf16>
    %c0_69 = arith.constant 0 : index
    %c16 = arith.constant 16 : index
    %105 = vector.load %arg17[%c0_69, %c16] : memref<8x32xbf16, #tpu.memory_space<vmem>>, vector<8x8xbf16>
    tpu.vector_store %arg17[%c0_69, %c16], %104 {strides = array<i32>} : memref<8x32xbf16, #tpu.memory_space<vmem>>, vector<8x8xbf16>,
    %c3_70 = arith.constant 3 : index
    %c0_71 = arith.constant 0 : index
    %c0_72 = arith.constant 0 : index
    %c0_73 = arith.constant 0 : index
    %106 = vector.load %arg16[%c3_70, %c0_71, %c0_72, %c0_73] : memref<4x1x8x8xbf16, #tpu.memory_space<vmem>>, vector<1x1x8x8xbf16>
    %107 = vector.shape_cast %106 : vector<1x1x8x8xbf16> to vector<1x8x8xbf16>
    %108 = vector.shape_cast %107 : vector<1x8x8xbf16> to vector<8x8xbf16>
    %c0_74 = arith.constant 0 : index
    %c24 = arith.constant 24 : index
    %109 = vector.load %arg17[%c0_74, %c24] : memref<8x32xbf16, #tpu.memory_space<vmem>>, vector<8x8xbf16>
    tpu.vector_store %arg17[%c0_74, %c24], %108 {strides = array<i32>} : memref<8x32xbf16, #tpu.memory_space<vmem>>, vector<8x8xbf16>,
    %c0_75 = arith.constant 0 : index
    %c0_76 = arith.constant 0 : index
    %110 = vector.load %arg17[%c0_75, %c0_76] : memref<8x32xbf16, #tpu.memory_space<vmem>>, vector<8x32xbf16>
    %c0_77 = arith.constant 0 : index
    %c0_78 = arith.constant 0 : index
    %111 = vector.load %arg6[%c0_77, %c0_78] : memref<32x32xbf16, #tpu.memory_space<vmem>>, vector<32x32xbf16>
    %cst_79 = arith.constant dense<0.000000e+00> : vector<8x32xf32>
    %112 = tpu.matmul %110, %111, %cst_79 {dimension_numbers = #tpu.dot_dimension_numbers<[1], [0], [0], [1], [0, 0, 1, 1], [], []>} : vector<8x32xbf16>, vector<32x32xbf16>, vector<8x32xf32> -> vector<8x32xf32>
    %c0_80 = arith.constant 0 : index
    %c0_81 = arith.constant 0 : index
    %113 = vector.load %arg7[%c0_80, %c0_81] : memref<1x32xf32, #tpu.memory_space<vmem>>, vector<1x32xf32>
    %114 = vector.broadcast %113 : vector<1x32xf32> to vector<8x32xf32>
    %115 = arith.addf %112, %114 : vector<8x32xf32>
    %116 = arith.addf %1, %115 : vector<8x32xf32>
    %cst_82 = arith.constant dense<0.000000e+00> : vector<8xf32>
    %117 = vector.multi_reduction <add>, %116, %cst_82 [1] : vector<8x32xf32> to vector<8xf32>
    %118 = vector.shape_cast %117 : vector<8xf32> to vector<8x1xf32>
    %cst_83 = arith.constant 3.200000e+01 : f32
    %119 = vector.broadcast %cst_83 : f32 to vector<8x1xf32>
    %120 = arith.divf %118, %119 : vector<8x1xf32>
    %121 = vector.broadcast %120 : vector<8x1xf32> to vector<8x32xf32>
    %122 = arith.subf %116, %121 : vector<8x32xf32>
    %123 = arith.mulf %122, %122 : vector<8x32xf32>
    %cst_84 = arith.constant dense<0.000000e+00> : vector<8xf32>
    %124 = vector.multi_reduction <add>, %123, %cst_84 [1] : vector<8x32xf32> to vector<8xf32>
    %125 = vector.shape_cast %124 : vector<8xf32> to vector<8x1xf32>
    %cst_85 = arith.constant 3.200000e+01 : f32
    %126 = vector.broadcast %cst_85 : f32 to vector<8x1xf32>
    %127 = arith.divf %125, %126 : vector<8x1xf32>
    %128 = vector.broadcast %120 : vector<8x1xf32> to vector<8x32xf32>
    %129 = arith.subf %116, %128 : vector<8x32xf32>
    %cst_86 = arith.constant 9.99999974E-6 : f32
    %130 = vector.broadcast %cst_86 : f32 to vector<8x1xf32>
    %131 = arith.addf %127, %130 : vector<8x1xf32>
    %132 = math.rsqrt %131 : vector<8x1xf32>
    %133 = vector.broadcast %132 : vector<8x1xf32> to vector<8x32xf32>
    %134 = arith.mulf %129, %133 : vector<8x32xf32>
    %c0_87 = arith.constant 0 : index
    %c0_88 = arith.constant 0 : index
    %135 = vector.load %arg8[%c0_87, %c0_88] : memref<1x32xf32, #tpu.memory_space<vmem>>, vector<1x32xf32>
    %136 = vector.broadcast %135 : vector<1x32xf32> to vector<8x32xf32>
    %137 = arith.mulf %134, %136 : vector<8x32xf32>
    %c0_89 = arith.constant 0 : index
    %c0_90 = arith.constant 0 : index
    %138 = vector.load %arg9[%c0_89, %c0_90] : memref<1x32xf32, #tpu.memory_space<vmem>>, vector<1x32xf32>
    %139 = vector.broadcast %138 : vector<1x32xf32> to vector<8x32xf32>
    %140 = arith.addf %137, %139 : vector<8x32xf32>
    %141 = arith.truncf %140 : vector<8x32xf32> to vector<8x32xbf16>
    %c0_91 = arith.constant 0 : index
    %c0_92 = arith.constant 0 : index
    %142 = vector.load %arg13[%c0_91, %c0_92] : memref<1x32xf32, #tpu.memory_space<vmem>>, vector<1x32xf32>
    %143 = vector.broadcast %142 : vector<1x32xf32> to vector<8x32xf32>
    %144 = arith.addf %116, %143 : vector<8x32xf32>
    %c0_93 = arith.constant 0 : index
    %c0_94 = arith.constant 0 : index
    %145 = vector.load %arg10[%c0_93, %c0_94] : memref<32x64xbf16, #tpu.memory_space<vmem>>, vector<32x64xbf16>
    %cst_95 = arith.constant dense<0.000000e+00> : vector<8x64xf32>
    %146 = tpu.matmul %141, %145, %cst_95 {dimension_numbers = #tpu.dot_dimension_numbers<[1], [0], [0], [1], [0, 0, 1, 1], [], []>} : vector<8x32xbf16>, vector<32x64xbf16>, vector<8x64xf32> -> vector<8x64xf32>
    %c0_96 = arith.constant 0 : index
    %c0_97 = arith.constant 0 : index
    %147 = vector.load %arg11[%c0_96, %c0_97] : memref<1x64xf32, #tpu.memory_space<vmem>>, vector<1x64xf32>
    %148 = vector.broadcast %147 : vector<1x64xf32> to vector<8x64xf32>
    %149 = arith.addf %146, %148 : vector<8x64xf32>
    %cst_98 = arith.constant 5.000000e-01 : f32
    %150 = vector.broadcast %cst_98 : f32 to vector<8x64xf32>
    %151 = arith.mulf %150, %149 : vector<8x64xf32>
    %cst_99 = arith.constant 0.707106769 : f32
    %152 = vector.broadcast %cst_99 : f32 to vector<8x64xf32>
    %153 = arith.mulf %149, %152 : vector<8x64xf32>
    %154 = math.absf %153 : vector<8x64xf32>
    %cst_100 = arith.constant 0.327591091 : f32
    %155 = vector.broadcast %cst_100 : f32 to vector<8x64xf32>
    %156 = arith.mulf %155, %154 : vector<8x64xf32>
    %cst_101 = arith.constant 1.000000e+00 : f32
    %157 = vector.broadcast %cst_101 : f32 to vector<8x64xf32>
    %158 = arith.addf %157, %156 : vector<8x64xf32>
    %cst_102 = arith.constant 1.000000e+00 : f32
    %159 = vector.broadcast %cst_102 : f32 to vector<8x64xf32>
    %160 = arith.divf %159, %158 : vector<8x64xf32>
    %cst_103 = arith.constant 1.06140542 : f32
    %161 = vector.broadcast %cst_103 : f32 to vector<8x64xf32>
    %162 = arith.mulf %160, %161 : vector<8x64xf32>
    %cst_104 = arith.constant -1.45315206 : f32
    %163 = vector.broadcast %cst_104 : f32 to vector<8x64xf32>
    %164 = arith.addf %163, %162 : vector<8x64xf32>
    %165 = arith.mulf %160, %164 : vector<8x64xf32>
    %cst_105 = arith.constant 1.42141378 : f32
    %166 = vector.broadcast %cst_105 : f32 to vector<8x64xf32>
    %167 = arith.addf %166, %165 : vector<8x64xf32>
    %168 = arith.mulf %160, %167 : vector<8x64xf32>
    %cst_106 = arith.constant -0.284496725 : f32
    %169 = vector.broadcast %cst_106 : f32 to vector<8x64xf32>
    %170 = arith.addf %169, %168 : vector<8x64xf32>
    %171 = arith.mulf %160, %170 : vector<8x64xf32>
    %cst_107 = arith.constant 0.254829586 : f32
    %172 = vector.broadcast %cst_107 : f32 to vector<8x64xf32>
    %173 = arith.addf %172, %171 : vector<8x64xf32>
    %174 = arith.mulf %160, %173 : vector<8x64xf32>
    %cst_108 = arith.constant 0.000000e+00 : f32
    %175 = vector.broadcast %cst_108 : f32 to vector<8x64xf32>
    %176 = arith.subf %175, %154 : vector<8x64xf32>
    %177 = arith.mulf %176, %154 : vector<8x64xf32>
    %178 = math.exp %177 : vector<8x64xf32>
    %179 = arith.mulf %174, %178 : vector<8x64xf32>
    %cst_109 = arith.constant 1.000000e+00 : f32
    %180 = vector.broadcast %cst_109 : f32 to vector<8x64xf32>
    %181 = arith.subf %180, %179 : vector<8x64xf32>
    %cst_110 = arith.constant 0.000000e+00 : f32
    %182 = vector.broadcast %cst_110 : f32 to vector<8x64xf32>
    %183 = arith.cmpf olt, %153, %182 : vector<8x64xf32>
    %cst_111 = arith.constant 0.000000e+00 : f32
    %184 = vector.broadcast %cst_111 : f32 to vector<8x64xf32>
    %185 = arith.subf %184, %181 : vector<8x64xf32>
    %186 = arith.select %183, %185, %181 : vector<8x64xi1>, vector<8x64xf32>
    %cst_112 = arith.constant 1.000000e+00 : f32
    %187 = vector.broadcast %cst_112 : f32 to vector<8x64xf32>
    %188 = arith.addf %187, %186 : vector<8x64xf32>
    %189 = arith.mulf %151, %188 : vector<8x64xf32>
    %190 = arith.truncf %189 : vector<8x64xf32> to vector<8x64xbf16>
    %c0_113 = arith.constant 0 : index
    %c0_114 = arith.constant 0 : index
    %191 = vector.load %arg12[%c0_113, %c0_114] : memref<64x32xbf16, #tpu.memory_space<vmem>>, vector<64x32xbf16>
    %cst_115 = arith.constant dense<0.000000e+00> : vector<8x32xf32>
    %192 = tpu.matmul %190, %191, %cst_115 {dimension_numbers = #tpu.dot_dimension_numbers<[1], [0], [0], [1], [0, 0, 1, 1], [], []>} : vector<8x64xbf16>, vector<64x32xbf16>, vector<8x32xf32> -> vector<8x32xf32>
    %193 = arith.addf %144, %192 : vector<8x32xf32>
    %194 = vector.shape_cast %193 : vector<8x32xf32> to vector<1x8x32xf32>
    %c0_116 = arith.constant 0 : index
    %c0_117 = arith.constant 0 : index
    %c0_118 = arith.constant 0 : index
    %195 = vector.load %arg14[%c0_116, %c0_117, %c0_118] : memref<1x8x32xf32, #tpu.memory_space<vmem>>, vector<1x8x32xf32>
    tpu.vector_store %arg14[%c0_116, %c0_117, %c0_118], %194 {strides = array<i32>} : memref<1x8x32xf32, #tpu.memory_space<vmem>>, vector<1x8x32xf32>,
    return
  }
  func.func @transform_0(%arg0: i32) -> (i32, i32, i32) {
    %c0_i32 = arith.constant 0 : i32
    %c0_i32_0 = arith.constant 0 : i32
    %c0_i32_1 = arith.constant 0 : i32
    return %arg0, %c0_i32, %c0_i32_0 : i32, i32, i32
  }
  func.func @transform_1(%arg0: i32) -> (i32, i32) {
    %c0_i32 = arith.constant 0 : i32
    %c0_i32_0 = arith.constant 0 : i32
    %c0_i32_1 = arith.constant 0 : i32
    return %c0_i32, %c0_i32_0 : i32, i32
  }
  func.func @transform_2(%arg0: i32) -> (i32, i32) {
    %c0_i32 = arith.constant 0 : i32
    %c0_i32_0 = arith.constant 0 : i32
    %c0_i32_1 = arith.constant 0 : i32
    return %c0_i32, %c0_i32_0 : i32, i32
  }
  func.func @transform_3(%arg0: i32) -> (i32, i32) {
    %c0_i32 = arith.constant 0 : i32
    %c0_i32_0 = arith.constant 0 : i32
    %c0_i32_1 = arith.constant 0 : i32
    return %c0_i32, %c0_i32_0 : i32, i32
  }
  func.func @transform_4(%arg0: i32) -> (i32, i32) {
    %c0_i32 = arith.constant 0 : i32
    %c0_i32_0 = arith.constant 0 : i32
    %c0_i32_1 = arith.constant 0 : i32
    return %c0_i32, %c0_i32_0 : i32, i32
  }
  func.func @transform_5(%arg0: i32) -> (i32, i32) {
    %c0_i32 = arith.constant 0 : i32
    %c0_i32_0 = arith.constant 0 : i32
    %c0_i32_1 = arith.constant 0 : i32
    return %c0_i32, %c0_i32_0 : i32, i32
  }
  func.func @transform_6(%arg0: i32) -> (i32, i32) {
    %c0_i32 = arith.constant 0 : i32
    %c0_i32_0 = arith.constant 0 : i32
    %c0_i32_1 = arith.constant 0 : i32
    return %c0_i32, %c0_i32_0 : i32, i32
  }
  func.func @transform_7(%arg0: i32) -> (i32, i32) {
    %c0_i32 = arith.constant 0 : i32
    %c0_i32_0 = arith.constant 0 : i32
    %c0_i32_1 = arith.constant 0 : i32
    return %c0_i32, %c0_i32_0 : i32, i32
  }
  func.func @transform_8(%arg0: i32) -> (i32, i32) {
    %c0_i32 = arith.constant 0 : i32
    %c0_i32_0 = arith.constant 0 : i32
    %c0_i32_1 = arith.constant 0 : i32
    return %c0_i32, %c0_i32_0 : i32, i32
  }
  func.func @transform_9(%arg0: i32) -> (i32, i32) {
    %c0_i32 = arith.constant 0 : i32
    %c0_i32_0 = arith.constant 0 : i32
    %c0_i32_1 = arith.constant 0 : i32
    return %c0_i32, %c0_i32_0 : i32, i32
  }
  func.func @transform_10(%arg0: i32) -> (i32, i32) {
    %c0_i32 = arith.constant 0 : i32
    %c0_i32_0 = arith.constant 0 : i32
    %c0_i32_1 = arith.constant 0 : i32
    return %c0_i32, %c0_i32_0 : i32, i32
  }
  func.func @transform_11(%arg0: i32) -> (i32, i32) {
    %c0_i32 = arith.constant 0 : i32
    %c0_i32_0 = arith.constant 0 : i32
    %c0_i32_1 = arith.constant 0 : i32
    return %c0_i32, %c0_i32_0 : i32, i32
  }
  func.func @transform_12(%arg0: i32) -> (i32, i32) {
    %c0_i32 = arith.constant 0 : i32
    %c0_i32_0 = arith.constant 0 : i32
    %c0_i32_1 = arith.constant 0 : i32
    return %c0_i32, %c0_i32_0 : i32, i32
  }
  func.func @transform_13(%arg0: i32) -> (i32, i32, i32) {
    %c0_i32 = arith.constant 0 : i32
    %c0_i32_0 = arith.constant 0 : i32
    %c0_i32_1 = arith.constant 0 : i32
    return %arg0, %c0_i32, %c0_i32_0 : i32, i32, i32
  }
}

</mosaic_0001>

<bundles_post_ra>
// kernel: tpu_custom_call.1
= control target key start
LH: loop header
LB: loop body
LE: loop exit
PB: predicated region body
PF: predicated region fallthrough
CT: control target
= control target key end

     0   :  { %s2083_s0 = inlined_call_operand.vmem [shape: f32[2,8,32], index: 0, kind: input, shape index: {}]   ;;  %s2084_s1 = inlined_call_operand.vmem [shape: f32[1,32], index: 1, kind: input, shape index: {}]   ;;  %s2085_s2 = inlined_call_operand.vmem [shape: f32[1,32], index: 2, kind: input, shape index: {}]   ;;  %s2086_s3 = inlined_call_operand.vmem [shape: bf16[32,96], index: 3, kind: input, shape index: {}]   ;;  %s2087_s4 = inlined_call_operand.hbm [shape: f32[1,96], index: 4, kind: input, shape index: {}]   ;;  %s2088_s5 = inlined_call_operand.vmem [shape: bf16[32,32], index: 5, kind: input, shape index: {}]   ;;  %s2089_s6 = inlined_call_operand.hbm [shape: f32[1,32], index: 6, kind: input, shape index: {}]   ;;  %s2090_s7 = inlined_call_operand.hbm [shape: f32[1,32], index: 7, kind: input, shape index: {}]   ;;  %s2091_s8 = inlined_call_operand.hbm [shape: f32[1,32], index: 8, kind: input, shape index: {}]   ;;  %s2092_s9 = inlined_call_operand.vmem [shape: bf16[32,64], index: 9, kind: input, shape index: {}]   ;;  %s2093_s10 = inlined_call_operand.vmem [shape: f32[1,64], index: 10, kind: input, shape index: {}]   ;;  %s2094_s11 = inlined_call_operand.vmem [shape: bf16[64,32], index: 11, kind: input, shape index: {}]   ;;  %s2095_s12 = inlined_call_operand.vmem [shape: f32[1,32], index: 12, kind: input, shape index: {}]   ;;  %s2096_s13 = inlined_call_operand.hbm [shape: f32[2,8,32], index: 13, kind: output, shape index: {}]  }
   0x1   :  { %2107 = sst [smem:[#allocation24_spill]] %s2096_s13 }
   0x2   :  { %18 = vsyncpa [#allocation6], 0 }
   0x3   :  { %19 = vsyncpa [#allocation9], 0 }
   0x4   :  { %20 = vsyncpa [#allocation12], 0 }
   0x5   :  { %21 = vsyncpa [#allocation7], 0 }
   0x6   :  { %23 = vsyncpa [#allocation7 + $0x1], 0  ;;  %s1741_s25 = smov 0   ;;  %s1743_s26 = smov 0  }
   0x7   :  { %s1745_s27 = smov 0   ;;  %s1747_s28 = smov 0  }
   0x8 LB: > { %2108 = sst [smem:[#allocation18_spill]] %s1630_s25  ;;  %s1762_s29 = sadd.s32 4294967295, %s1642_s28   ;;  %s1642_s28 = sphi %s1747_s28, %s2132_s28   ;;  %s1638_s27 = sphi %s1745_s27, %s2134_s27   ;;  %s1634_s26 = sphi %s1743_s26, %s2136_s26   ;;  %s1630_s25 = sphi %s1741_s25, %s2135_s25  }
   0x9   : > { %2109 = sst [smem:[#allocation19_spill]] %s1638_s27  ;;  %s1208_s30 = sadd.s32 4294967294, %s1642_s28  }
   0xa   : > { %2110 = sst [smem:[#allocation20_spill]] %s1642_s28  ;;  %s1766_s14 = sadd.s32 1, %s1642_s28  }
   0xb   : > { %2111 = sst [smem:[#allocation21_spill]] %s1766_s14  ;;  %s314_s15 = sadd.s32 1, %s1638_s27 }
   0xc   : > { %s311_s16 = ssub.s32 %s1642_s28, %s1766_s14  ;;  %p324_p0 = scmp.ne.s32.totalorder %s1638_s27, %s1634_s26 }
   0xd   : > { %p312_p1 = scmp.eq.s32.totalorder %s311_s16, 0  ;;  %p325_p2 = scmp.eq.s32.totalorder %s1762_s29, 1 }
   0xe   : > { %p330_p3 = scmp.ne.s32.totalorder %s1634_s26, %s1630_s25  ;;  %p331_p4 = scmp.eq.s32.totalorder %s1208_s30, 1 }
   0xf   : > { %s1777_s17 = scalar_select %p312_p1, %s1638_s27, %s314_s15  }
  0x10   : > { %p1779_p5 = por %p325_p2, %p324_p0  ;;  %p1783_p6 = por %p331_p4, %p330_p3 }
  0x11   : > { %2112 = sst [smem:[#allocation22_spill]] %s1777_s17  ;;  %p1209_p7 = scmp.ge.s32.totalorder %s1642_s28, 1 }
  0x12   : > { %s2113_s18 = scalar_select %p1779_p5, 1, 0 }
  0x13   : > { %s2114_s19 = scalar_select %p1783_p6, 1, 0 }
  0x14   : > { %p338_p8 = scmp.lt.s32.totalorder %s1642_s28, 3  ;;  %p2102_p9 = scmp.eq.s32.totalorder %s1762_s29, 0 }
  0x15   : > { %2115 = sst [smem:[#allocation23_spill]] %s2114_s19  ;;  %s1648_s21 = smov [#allocation8]  }
  0x16   : > { %p1790_p10 = pnand %p1209_p7, %p338_p8  ;;  %s374_s22 = sshll.u32 %s1648_s21, 4  ;;  %s375_s22 = int_to_ptr.vmem [resolvable:$true] %s374_s22 }
  0x17   : > { %s1649_s23 = smov [#allocation5]   ;;  %s1650_s15 = smov [#allocation10]  }
  0x18   : > { %s2116_s20 = scalar_select %p1790_p10, 1, 0 }
  0x19   : > { %p1342_p11 = pneg %p1790_p10  ;;  %s360_s24 = sshll.u32 %s1649_s23, 4  ;;  %s1802_s24 = int_to_ptr.vmem [resolvable:$true] %s360_s24 }
  0x1a   : > { %s385_s16 = sshll.u32 %s1650_s15, 4  ;;  %s1452_s21 = scalar_lea.hbm %s2089_s6, 16  ;;  %s1804_s16 = int_to_ptr.vmem [resolvable:$true] %s385_s16 }
  0x1b   : > { %p1798_p12 = pnand %p2102_p9, %p1342_p11  ;;  %p1453_p13 = scmp.ne.s32.totalorder %s2089_s6, %s1452_s21 }
  0x1c   : > { %p1459_p3 = scmp.lt.u32.totalorder %s1452_s21, %s2089_s6 }
  0x1d   : > { %p1814_p0 = pneg %p1798_p12 }
  0x1f   : > { %p1455_p1 = pnand %p1814_p0, %p1453_p13 }
  0x21   : > { %p1456_p2 = pneg %p1455_p1 }
  0x23   : > { %p1461_p4 = pnand %p1459_p3, %p1456_p2 }
  0x25   : > { %1464 = shalt.err (!%p1461_p4)
}
  0x26   : > { %s1465_s27 = scalar_lea.vmem %s375_s22, 16  ;;  %s1472_s14 = scalar_lea.vmem %s375_s22, 32 }
  0x27   : > { %p1466_p7 = scmp.ne.s32.totalorder %s375_s22, %s1465_s27  ;;  %p1473_p9 = scmp.lt.s32.totalorder %s375_s22, %s375_s22 }
  0x28   : > { %p1474_p6 = scmp.lt.s32.totalorder %s1472_s14, %s1465_s27 }
  0x29   : > { %p1468_p8 = pnand %p1466_p7, %p1814_p0 }
  0x2a   : > { %p1475_p5 = por %p1474_p6, %p1473_p9 }
  0x2b   : > { %p1469_p11 = pneg %p1468_p8 }
  0x2d   : > { %p1476_p10 = pnand %p1475_p5, %p1469_p11 }
  0x2f   : > { %1479 = shalt.err (!%p1476_p10)
}
  0x30   : > { %1348 = dma.hbm_to_vmem [thread:$0]  (!%p1798_p12), %s2089_s6, 16, %s375_s22, [#allocation9]  }
  0x31   : > { %s1480_s15 = scalar_lea.hbm %s2087_s4, 16 }
  0x32   : > { %p1481_p13 = scmp.ne.s32.totalorder %s2087_s4, %s1480_s15  ;;  %p1487_p5 = scmp.lt.u32.totalorder %s1480_s15, %s2087_s4 }
  0x34   : > { %p1483_p1 = pnand %p1481_p13, %p1814_p0 }
  0x36   : > { %p1484_p6 = pneg %p1483_p1 }
  0x38   : > { %p1489_p9 = pnand %p1487_p5, %p1484_p6 }
  0x3a   : > { %1492 = shalt.err (!%p1489_p9)
}
  0x3b   : > { %s1493_s22 = scalar_lea.vmem %s1802_s24, 16  ;;  %s1500_s13 = scalar_lea.vmem %s1802_s24, 32 }
  0x3c   : > { %p1494_p10 = scmp.ne.s32.totalorder %s1802_s24, %s1493_s22  ;;  %p1501_p4 = scmp.lt.s32.totalorder %s1802_s24, %s1802_s24 }
  0x3d   : > { %p1502_p7 = scmp.lt.s32.totalorder %s1500_s13, %s1493_s22 }
  0x3e   : > { %p1496_p2 = pnand %p1494_p10, %p1814_p0 }
  0x3f   : > { %p1503_p8 = por %p1502_p7, %p1501_p4 }
  0x40   : > { %p1497_p3 = pneg %p1496_p2 }
  0x42   : > { %p1504_p11 = pnand %p1503_p8, %p1497_p3 }
  0x44   : > { %1507 = shalt.err (!%p1504_p11)
}
  0x45   : > { %1345 = dma.hbm_to_vmem [thread:$0]  (!%p1798_p12), %s2087_s4, 16, %s1802_s24, [#allocation6]  }
  0x46   : > { %s1508_s21 = scalar_lea.hbm %s2090_s7, 16 }
  0x47   : > { %p1509_p13 = scmp.ne.s32.totalorder %s2090_s7, %s1508_s21  ;;  %p1515_p5 = scmp.lt.u32.totalorder %s1508_s21, %s2090_s7 }
  0x49   : > { %p1511_p1 = pnand %p1509_p13, %p1814_p0 }
  0x4b   : > { %p1512_p6 = pneg %p1511_p1 }
  0x4d   : > { %p1517_p9 = pnand %p1515_p5, %p1512_p6 }
  0x4f   : > { %1520 = shalt.err (!%p1517_p9)
}
  0x50   : > { %s1521_s24 = scalar_lea.vmem %s1804_s16, 16  ;;  %s1528_s13 = scalar_lea.vmem %s1804_s16, 32 }
  0x51   : > { %p1522_p10 = scmp.ne.s32.totalorder %s1804_s16, %s1521_s24  ;;  %p1529_p4 = scmp.lt.s32.totalorder %s1804_s16, %s1804_s16 }
  0x52   : > { %p1530_p7 = scmp.lt.s32.totalorder %s1528_s13, %s1521_s24 }
  0x53   : > { %p1524_p2 = pnand %p1522_p10, %p1814_p0 }
  0x54   : > { %p1531_p8 = por %p1530_p7, %p1529_p4 }
  0x55   : > { %p1525_p3 = pneg %p1524_p2 }
  0x57   : > { %p1532_p11 = pnand %p1531_p8, %p1525_p3 }
  0x59   : > { %1535 = shalt.err (!%p1532_p11)
}
  0x5a   : > { %1351 = dma.hbm_to_vmem [thread:$0]  (!%p1798_p12), %s2090_s7, 16, %s1804_s16, [#allocation9]  }
  0x5b   : > { %s1651_s19 = smov [#allocation11]   ;;  %s1536_s27 = scalar_lea.hbm %s2091_s8, 16 }
  0x5c   : > { %s396_s25 = sshll.u32 %s1651_s19, 4  ;;  %p1537_p13 = scmp.ne.s32.totalorder %s2091_s8, %s1536_s27  ;;  %s397_s25 = int_to_ptr.vmem [resolvable:$true] %s396_s25 }
  0x5d   : > { %p1543_p5 = scmp.lt.u32.totalorder %s1536_s27, %s2091_s8 }
  0x5e   : > { %p1539_p1 = pnand %p1537_p13, %p1814_p0 }
  0x60   : > { %p1540_p6 = pneg %p1539_p1 }
  0x62   : > { %p1545_p9 = pnand %p1543_p5, %p1540_p6 }
  0x64   : > { %1548 = shalt.err (!%p1545_p9)
}
  0x65   : > { %s1549_s16 = scalar_lea.vmem %s397_s25, 16  ;;  %s1556_s28 = scalar_lea.vmem %s397_s25, 32 }
  0x66   : > { %p1550_p10 = scmp.ne.s32.totalorder %s397_s25, %s1549_s16  ;;  %p1557_p4 = scmp.lt.s32.totalorder %s397_s25, %s397_s25 }
  0x67   : > { %p1558_p7 = scmp.lt.s32.totalorder %s1556_s28, %s1549_s16 }
  0x68   : > { %p1552_p2 = pnand %p1550_p10, %p1814_p0 }
  0x69   : > { %p1559_p8 = por %p1558_p7, %p1557_p4 }
  0x6a   : > { %p1553_p3 = pneg %p1552_p2 }
  0x6c   : > { %p1560_p11 = pnand %p1559_p8, %p1553_p3 }
  0x6e   : > { %1563 = shalt.err (!%p1560_p11)
}
  0x6f   : > { %1354 = dma.hbm_to_vmem [thread:$0]  (!%p1798_p12), %s2091_s8, 16, %s397_s25, [#allocation12]  }
  0x70   : > { %p2119_p13 = scmp.ne.s32.totalorder %s2116_s20, 0 }
  0x71   : > { %p2120_p1 = scmp.eq.s32.totalorder (!%p2119_p13), %s1762_s29, 0 }
  0x72   : > { %428 = sbr.rel (%p2119_p13) target bundleno = 2731 (0xaab), region = 72 }
  0x79   : > { %1613 = dma.done.wait (%p2120_p1), [#allocation6], 16   ;;  %p2121_p0 = pmov %p2120_p1 }
  0x7b   : > { %1615 = vsyncadd (%p2121_p0), [#allocation6], 4294967280  ;;  %p2122_p6 = pmov %p2121_p0 }
  0x7c   : > { %p2123_p5 = pmov %p2121_p0 }
  0x7d   : > { %1617 = dma.done.wait (%p2122_p6), [#allocation9], 32  }
  0x7e   : > { %1619 = vsyncadd (%p2123_p5), [#allocation9], 4294967264  ;;  %p2124_p9 = pmov %p2121_p0 }
  0x7f   : > { %p2125_p12 = pmov %p2121_p0 }
  0x80   : > { %1621 = dma.done.wait (%p2124_p9), [#allocation12], 16  }
  0x81   : > { %1623 = vsyncadd (%p2125_p12), [#allocation12], 4294967280  ;;  %p483_p10 = scmp.lt.s32.totalorder %s1762_s29, 1  ;;  %vm489_vm0 = vcmask 261120   ;;  %s480_s15 = sand.u32 1, %s1634_s26   ;;  %v1430_v7 = vld [vmem:[%s2086_s3] sm:$0xff]  }
  0x82   : > { %s1927_s22 = sshll.u32 %s480_s15, 3  ;;  %v1652_v8 = vmov 0.0   ;;  %vm1653_vm1 = vmmov 0   ;;  %v1431_v9 = vld [vmem:[%s2086_s3 + $0x8] sm:$0xff]   ;;  %v1222_v14 = vld [vmem:[%s2084_s1] ss:$0 sm:$0xff] }
  0x83   : > { %s484_s20 = scalar_select %p483_p10, %s1762_s29, 1  ;;  %1276 = vmatprep.subr.bf16.mxu0 %v1652_v8  ;;  %1280 = vmatprep.mubr.msk.bf16.mxu0 %vm1653_vm1, %v1652_v8  ;;  %v1223_v16 = vld [vmem:[%s2085_s2] ss:$0 sm:$0xff]  ;;  %v1224_v20 = vld [vmem:[#allocation5] ss:$0 sm:$0xff]  ;;  %vm588_vm2 = vcmask 60416  }
  0x84   : > { %1277 = vmatpush3.bf16.msra.mxu0 %v1430_v7  ;;  %s1656_s23 = smov 48   ;;  %s1657_s25 = smov 112  }
  0x85   : > { %s1221_s30 = sshll.u32 %s484_s20, 3  ;;  %1278 = vmatprep.subr.bf16.mxu0 %v1652_v8  ;;  %s1654_s20 = smov 104  }
  0x86   : > { %s486_s21 = scalar_lea.vmem %s2083_s0, %s1221_s30  ;;  %s1655_s30 = smov 120  }
  0x87   : > { %v1915_v0 = vld [vmem:[%s486_s21] sm:$0xff]  ;;  %s1658_s21 = smov 96   ;;  %s1659_s27 = smov 88  }
  0x88   : > { %v490_v1 = vsel %vm489_vm0, %v1915_v0, 0.0  ;;  %1279 = vmatpush3.bf16.msra.mxu0 %v1431_v9  ;;  %s1660_s14 = smov 80   ;;  %s1661_s24 = smov 72  }
  0x89   : > { %491 = vadd.xlane.f32.xlu0 %v490_v1  ;;  %s1662_s13 = smov 64   ;;  %s1663_s16 = smov 56  }
  0x8a   : > { %s1664_s28 = smov 40   ;;  %s482_s17 = scalar_lea.vmem [#allocation13], %s1927_s22 }
  0x8b   : > { %s1956_s19 = smov 0  }
 0x116   : > { %v492_v2 = vpop.xlane.xlu0 %491 }
 0x117   : > { %v494_v3 = vmul.f32 0.03125, %v492_v2 }
 0x119   : > { %v495_v4 = vsub.f32 %v1915_v0, %v494_v3 }
 0x11b   : > { %v496_v5 = vmul.f32 %v495_v4, %v495_v4 }
 0x11d   : > { %v497_v6 = vsel %vm489_vm0, %v496_v5, 0.0 }
 0x11e   : > { %498 = vadd.xlane.f32.xlu0 %v497_v6 }
 0x1ab   : > { %v499_v10 = vpop.xlane.xlu0 %498 }
 0x1ac   : > { %v500_v11 = vmul.f32 0.03125, %v499_v10 }
 0x1ae   : > { %v501_v12 = vadd.f32 1e-05, %v500_v11 }
 0x1b0   : > { %1432 = vrsqrt.f32 %v501_v12 }
 0x1ba   : > { %v1433_v13 = vpop.eup %1432 }
 0x1bb   : > { %v503_v15 = vmul.f32 %v1433_v13, %v495_v4 }
 0x1bd   : > { %v511_v17 = vmul.f32 %v1222_v14, %v503_v15 }
 0x1bf   : > { %v519_v18 = vadd.f32 %v1223_v16, %v511_v17 }
 0x1c1   : > { %v520_v19 = vpack.c.bf16 %v519_v18, %v519_v18 }
 0x1c3   : > { %1281 = vmatmul.mubr.msk.bf16.vlgmr.msra.gmra.mrb[0].mxu0 %vm489_vm0, %v520_v19 }
 0x296   : > { %v581_v21 = vpop.f32.mrb[0].mxu0 }
 0x297   : > { %v582_v22 = vadd.f32 %v1224_v20, %v581_v21  ;;  %v1282_v23 = vpop.f32.mrb[1].mxu0 }
 0x298   : > { %v584_v24 = vpop.f32.mrb[2].mxu0 }
 0x299   : > { %v587_v25 = vpack.c.bf16 %v582_v22, %v582_v22  ;;  %v1283_v26 = vpop.f32.mrb[3].mxu0 }
 0x29b   : > { %603 = vrot.lane.b32.xlu0 %v587_v25, %s1654_s20  ;;  %593 = vrot.lane.b32.xlu1 %v587_v25, %s1655_s30  ;;  %589 = vst.msk [vmem:[#allocation2] sm:$0xf] %vm588_vm2, %v587_v25 }
 0x29f   : > { %638 = vrot.lane.b32.xlu0 %v587_v25, %s1656_s23  ;;  %598 = vrot.lane.b32.xlu1 %v587_v25, %s1657_s25 }
 0x2a3   : > { %608 = vrot.lane.b32.xlu1 %v587_v25, %s1658_s21 }
 0x2a7   : > { %613 = vrot.lane.b32.xlu1 %v587_v25, %s1659_s27 }
 0x2ab   : > { %618 = vrot.lane.b32.xlu1 %v587_v25, %s1660_s14 }
 0x2af   : > { %623 = vrot.lane.b32.xlu1 %v587_v25, %s1661_s24 }
 0x2b3   : > { %628 = vrot.lane.b32.xlu1 %v587_v25, %s1662_s13 }
 0x2b7   : > { %633 = vrot.lane.b32.xlu1 %v587_v25, %s1663_s16 }
 0x2bb   : > { %643 = vrot.lane.b32.xlu1 %v587_v25, %s1664_s28 }
 0x30d   : > { %v604_v27 = vpop.permute.xlu0 %603  ;;  %v594_v28 = vpop.permute.xlu1 %593 }
 0x30e   : > { %607 = vst.msk [vmem:[#allocation2 + $0xc] sm:$0xf] %vm588_vm2, %v604_v27  ;;  %597 = vst.msk [vmem:[#allocation2 + $0x4] sm:$0xf] %vm588_vm2, %v594_v28 }
 0x311   : > { %v639_v29 = vpop.permute.xlu0 %638  ;;  %v599_v30 = vpop.permute.xlu1 %598 }
 0x312   : > { %642 = vst.msk [vmem:[#allocation2 + $0x28] sm:$0xf] %vm588_vm2, %v639_v29  ;;  %602 = vst.msk [vmem:[#allocation2 + $0x8] sm:$0xf] %vm588_vm2, %v599_v30 }
 0x315   : > { %v609_v31 = vpop.permute.xlu1 %608 }
 0x316   : > { %612 = vst.msk [vmem:[#allocation2 + $0x10] sm:$0xf] %vm588_vm2, %v609_v31 }
 0x319   : > { %v614_v32 = vpop.permute.xlu1 %613 }
 0x31a   : > { %617 = vst.msk [vmem:[#allocation2 + $0x14] sm:$0xf] %vm588_vm2, %v614_v32 }
 0x31d   : > { %v619_v33 = vpop.permute.xlu1 %618 }
 0x31e   : > { %622 = vst.msk [vmem:[#allocation2 + $0x18] sm:$0xf] %vm588_vm2, %v619_v33 }
 0x321   : > { %v624_v34 = vpop.permute.xlu1 %623 }
 0x322   : > { %627 = vst.msk [vmem:[#allocation2 + $0x1c] sm:$0xf] %vm588_vm2, %v624_v34 }
 0x325   : > { %v629_v35 = vpop.permute.xlu1 %628 }
 0x326   : > { %632 = vst.msk [vmem:[#allocation2 + $0x20] sm:$0xf] %vm588_vm2, %v629_v35 }
 0x329   : > { %v634_v36 = vpop.permute.xlu1 %633 }
 0x32a   : > { %637 = vst.msk [vmem:[#allocation2 + $0x24] sm:$0xf] %vm588_vm2, %v634_v36 }
 0x32d   : > { %v644_v37 = vpop.permute.xlu1 %643 }
 0x32e   : > { %647 = vst.msk [vmem:[#allocation2 + $0x2c] sm:$0xf] %vm588_vm2, %v644_v37 }
 0x32f LB: >> { %v1665_v38 = vmov 0.0   ;;  %vm1666_vm3 = vmmov 0   ;;  %s1229_s20 = sshll.u32 %s1646_s19, 2  ;;  %vm665_vm4 = vcmask 64512   ;;  %vm727_vm5 = vcmask 1043456   ;;  %s653_s19 = sadd.s32 1, %s1646_s19   ;;  %s1646_s19 = sphi %s1956_s19, %s653_s19  }
 0x330   : >> { %1284 = vmatprep.subr.bf16.mxu0 %v1665_v38  ;;  %1286 = vmatprep.mubr.msk.bf16.mxu0 %vm1666_vm3, %v1665_v38  ;;  %s655_s30 = scalar_lea.vmem [#allocation2], %s1229_s20  ;;  %s773_s23 = scalar_lea.vmem [#allocation3], %s1229_s20 }
 0x331   : >> { %1290 = vmatprep.subr.bf16.mxu1 %v1665_v38  ;;  %1292 = vmatprep.mubr.msk.bf16.mxu1 %vm1666_vm3, %v1665_v38  ;;  %p650_p2 = scmp.ge.s32.totalorder %s653_s19, 4  }
 0x332   : > { %s1667_s25 = smov (%p650_p2), 8   ;;  %s1668_s21 = smov (%p650_p2), 24   ;;  %v1438_v4 = vld [vmem:[%s2088_s5] sm:$0xff] (%p650_p2)   ;;  %v1439_v5 = vld [vmem:[%s2088_s5 + $0x8] sm:$0xff] (%p650_p2)   ;;  %vm783_vm6 = vcmask (%p650_p2), 126016   ;;  %vm791_vm7 = vcmask (%p650_p2), 191616  }
 0x333   : > { %s1669_s16 = smov (%p650_p2), 16   ;;  %vm799_vm8 = vcmask (%p650_p2), 257216   ;;  %v1237_v11 = vld [vmem:[#allocation8] ss:$0 sm:$0xff] (%p650_p2)  ;;  %v1241_v29 = vld [vmem:[#allocation10] ss:$0 sm:$0xff] (%p650_p2) }
 0x334   : > { %v1440_v24 = vld [vmem:[%s2092_s9] sm:$0xff] (%p650_p2)   ;;  %v1242_v31 = vld [vmem:[#allocation11] ss:$0 sm:$0xff] (%p650_p2)  ;;  %v1444_v37 = vld [vmem:[%s2094_s11 + $0x10] sm:$0xff] (%p650_p2)   ;;  %vm1033_vm10 = vcmask (%p650_p2), 523264   ;;  %s2126_s14 = sld [smem:[#allocation24_spill]] (%p650_p2) }
 0x335   : >> { %v1231_v39 = vld [vmem:[%s655_s30 + $0x10] sm:$0xf]  ;;  %v656_v41 = vld [vmem:[%s655_s30] sm:$0xf]  ;;  %v1443_v36 = vld [vmem:[%s2094_s11 + $0x8] sm:$0xff] (%p650_p2)   ;;  %p2127_p4 = scmp.ne.s32.totalorder (%p650_p2), %s2113_s18, 0 }
 0x336   : >> { %v670_v40 = vsel %vm665_vm4, %v1231_v39, 0  ;;  %v1233_v52 = vld [vmem:[%s655_s30 + $0x20] sm:$0xf]  ;;  %v1445_v38 = vld [vmem:[%s2094_s11 + $0x18] sm:$0xff] (%p650_p2)  }
 0x337   : >> { %1285 = vmatpush3.bf16.xpose.msra.mxu0 %v670_v40  ;;  %v729_v53 = vsel %vm727_vm5, %v1233_v52, 0  ;;  %v1442_v35 = vld [vmem:[%s2094_s11] sm:$0xff] (%p650_p2)  }
 0x338   : >> { %1291 = vmatpush3.bf16.msra.mxu1 %v729_v53  ;;  %1312 = vmatprep.subr.bf16.mxu0 (%p650_p2), %v1652_v8  ;;  %v1244_v39 = vld [vmem:[%s2093_s10] ss:$0 sm:$0xff] (%p650_p2) }
 0x339   : > { %1296 = vmatprep.subr.bf16.mxu1 (%p650_p2), %v1652_v8 }
 0x33e   : >> { %1287 = vmatmul.mubr.msk.bf16.vlgmr.msra.gmra.mrb[0].mxu0 %vm665_vm4, %v656_v41 }
 0x33f   : > { %1320 = vmatprep.mubr.msk.bf16.mxu0 (%p650_p2), %vm1653_vm1, %v1652_v8  ;;  %1313 = vmatpush3.bf16.msra.mxu0 (%p650_p2), %v1442_v35 }
 0x340   : > { %1314 = vmatprep.subr.bf16.mxu0 (%p650_p2), %v1652_v8 }
 0x343   : > { %1315 = vmatpush3.bf16.msra.mxu0 (%p650_p2), %v1443_v36 }
 0x344   : > { %1316 = vmatprep.subr.bf16.mxu0 (%p650_p2), %v1652_v8 }
 0x347   : > { %1317 = vmatpush3.bf16.msra.mxu0 (%p650_p2), %v1444_v37 }
 0x348   : > { %1318 = vmatprep.subr.bf16.mxu0 (%p650_p2), %v1652_v8 }
 0x34b   : > { %1319 = vmatpush3.bf16.msra.mxu0 (%p650_p2), %v1445_v38 }
 0x411   : >> { %v706_v42 = vpop.f32.mrb[0].mxu0 }
 0x412   : >> { %v1288_v43 = vpop.f32.mrb[1].mxu0  ;;  %v712_v44 = vsel %vm665_vm4, %v706_v42, -inf }
 0x413   : >> { %713 = vmax.xlane.f32.xlu0 %v712_v44  ;;  %v709_v45 = vpop.f32.mrb[2].mxu0 }
 0x414   : >> { %v1289_v46 = vpop.f32.mrb[3].mxu0 }
 0x4a0   : >> { %v714_v47 = vpop.xlane.xlu0 %713 }
 0x4a1   : >> { %v715_v48 = vsub.f32 %v706_v42, %v714_v47 }
 0x4a3   : >> { %v716_v49 = vmul.f32 1.442695, %v715_v48 }
 0x4a5   : >> { %1434 = vpow2.f32 %v716_v49 }
 0x4af   : >> { %v1435_v50 = vpop.eup %1434 }
 0x4b0   : >> { %v718_v51 = vsel %vm665_vm4, %v1435_v50, 0.0 }
 0x4b1   : >> { %719 = vadd.xlane.f32.xlu0 %v718_v51 }
 0x53e   : >> { %v720_v54 = vpop.xlane.xlu0 %719 }
 0x53f   : >> { %1436 = vrcp.f32 %v720_v54 }
 0x549   : >> { %v1437_v55 = vpop.eup %1436 }
 0x54a   : >> { %v722_v56 = vmul.f32 %v1437_v55, %v1435_v50 }
 0x54c   : >> { %v723_v57 = vpack.c.bf16 %v722_v56, %v722_v56 }
 0x54e   : >> { %1293 = vmatmul.mubr.msk.bf16.vlgmr.msra.gmra.mrb[0].mxu1 %vm665_vm4, %v723_v57 }
 0x54f   : > { %1300 = vmatprep.mubr.msk.bf16.mxu1 (%p650_p2), %vm1653_vm1, %v1652_v8  ;;  %1297 = vmatpush3.bf16.msra.mxu1 (%p650_p2), %v1438_v4 }
 0x550   : > { %1298 = vmatprep.subr.bf16.mxu1 (%p650_p2), %v1652_v8 }
 0x553   : > { %1299 = vmatpush3.bf16.msra.mxu1 (%p650_p2), %v1439_v5 }
 0x554   : > { %1304 = vmatprep.subr.bf16.mxu1 (%p650_p2), %v1652_v8 }
 0x61e   : > { %652 = sbr.rel (!%p650_p2) target bundleno = 815 (0x32f), region = 149 }
 0x621   : >> { %v765_v58 = vpop.f32.mrb[0].mxu1 }
 0x622   : >> { %v771_v59 = vpack.c.bf16 %v765_v58, %v765_v58  ;;  %v1294_v60 = vpop.f32.mrb[1].mxu1 }
 0x623   : >> { %v768_v61 = vpop.f32.mrb[2].mxu1 }
 0x624   : >> { %774 = vst.msk [vmem:[%s773_s23] sm:$0xf] %vm588_vm2, %v771_v59  ;;  %v1295_v62 = vpop.f32.mrb[3].mxu1  ;;  %s1254_s23 = sshll.u32 (%p650_p2), %s1762_s29, 7  ;;  %s1080_s29 = scalar_lea.sflag (%p650_p2), [#allocation7], %s480_s15 }
 0x625   : > { %s2036_s24 = scalar_lea.hbm %s2126_s14, %s1254_s23 }
 0x62b   : > { %v778_v63 = vld [vmem:[#allocation3 + $0x4] sm:$0xf]  ;;  %v786_v1 = vld [vmem:[#allocation3 + $0x8] sm:$0xf]  ;;  %v794_v2 = vld [vmem:[#allocation3 + $0xc] sm:$0xf] }
 0x62c   : > { %780 = vrot.lane.b32.xlu0 %v778_v63, %s1667_s25  ;;  %v775_v3 = vld [vmem:[#allocation3] sm:$0xf]  ;;  %796 = vrot.lane.b32.xlu1 %v794_v2, %s1668_s21  ;;  %s1093_s25 = sshll.u32 %s482_s17, 4  ;;  %s2038_s25 = int_to_ptr.vmem [resolvable:$true] %s1093_s25 }
 0x62d   : > { %776 = vst.msk [vmem:[#allocation4] sm:$0xf] %vm588_vm2, %v775_v3  ;;  %s1564_s13 = scalar_lea.vmem %s2038_s25, 128 }
 0x62e   : > { %p1565_p3 = scmp.ne.s32.totalorder %s2038_s25, %s1564_s13 }
 0x630   : > { %788 = vrot.lane.b32.xlu0 %v786_v1, %s1669_s16  ;;  %p1566_p7 = pnand %p1565_p3, %p2127_p4  ;;  %s1670_s16 = smov [#allocation13]  }
 0x631   : > { %s1568_s28 = sshll.u32 %s1670_s16, 4  ;;  %s1569_s28 = int_to_ptr.vmem [resolvable:$false] %s1568_s28 }
 0x632   : > { %p1567_p8 = pneg %p1566_p7  ;;  %s1570_s19 = scalar_lea.vmem %s1569_s28, 256 }
 0x633   : > { %p1571_p11 = scmp.lt.s32.totalorder %s2038_s25, %s1569_s28  ;;  %p1572_p13 = scmp.lt.s32.totalorder %s1570_s19, %s1564_s13 }
 0x635   : > { %p1573_p1 = por %p1572_p13, %p1571_p11 }
 0x637   : > { %p1574_p0 = pnand %p1573_p1, %p1567_p8 }
 0x69e   : > { %v781_v6 = vpop.permute.xlu0 %780  ;;  %v797_v7 = vpop.permute.xlu1 %796 }
 0x69f   : > { %784 = vst.msk [vmem:[#allocation4] sm:$0xf] %vm783_vm6, %v781_v6 }
 0x6a2   : > { %v789_v9 = vpop.permute.xlu0 %788 }
 0x6a3   : > { %792 = vst.msk [vmem:[#allocation4] sm:$0xf] %vm791_vm7, %v789_v9 }
 0x6a4   : > { %800 = vst.msk [vmem:[#allocation4] sm:$0xf] %vm799_vm8, %v797_v7  ;;  %v1243_v7 = vld [vmem:[%s2095_s12] ss:$0 sm:$0xff] }
 0x6ab   : > { %v801_v10 = vld [vmem:[#allocation4] sm:$0xf] }
 0x6ac   : > { %1301 = vmatmul.mubr.msk.bf16.vlgmr.msra.gmra.mrb[0].mxu1 %vm489_vm0, %v801_v10 }
 0x6ad   : > { %1308 = vmatprep.mubr.msk.bf16.mxu1 %vm1653_vm1, %v1652_v8  ;;  %1305 = vmatpush3.bf16.msra.mxu1 %v1440_v24 }
 0x6ae   : > { %1306 = vmatprep.subr.bf16.mxu1 %v1652_v8 }
 0x77f   : > { %v862_v12 = vpop.f32.mrb[0].mxu1 }
 0x780   : > { %v863_v13 = vadd.f32 %v1237_v11, %v862_v12  ;;  %v1302_v14 = vpop.f32.mrb[1].mxu1 }
 0x781   : > { %v865_v15 = vpop.f32.mrb[2].mxu1 }
 0x782   : > { %v1994_v16 = vadd.f32 %v863_v13, %v1915_v0  ;;  %v1303_v17 = vpop.f32.mrb[3].mxu1  ;;  %v1441_v0 = vld [vmem:[%s2092_s9 + $0x8] sm:$0xff]  }
 0x783   : > { %1307 = vmatpush3.bf16.msra.mxu1 %v1441_v0 }
 0x784   : > { %v869_v18 = vsel %vm489_vm0, %v1994_v16, 0.0  ;;  %v906_v9 = vadd.f32 %v1243_v7, %v1994_v16 }
 0x785   : > { %870 = vadd.xlane.f32.xlu1 %v869_v18 }
 0x812   : > { %v871_v19 = vpop.xlane.xlu1 %870 }
 0x813   : > { %v872_v20 = vmul.f32 0.03125, %v871_v19 }
 0x815   : > { %v873_v21 = vsub.f32 %v1994_v16, %v872_v20 }
 0x817   : > { %v874_v22 = vmul.f32 %v873_v21, %v873_v21 }
 0x819   : > { %v875_v23 = vsel %vm489_vm0, %v874_v22, 0.0 }
 0x81a   : > { %876 = vadd.xlane.f32.xlu0 %v875_v23 }
 0x8a7   : > { %v877_v25 = vpop.xlane.xlu0 %876 }
 0x8a8   : > { %v878_v26 = vmul.f32 0.03125, %v877_v25 }
 0x8aa   : > { %v879_v27 = vadd.f32 1e-05, %v878_v26 }
 0x8ac   : > { %1446 = vrsqrt.f32 %v879_v27 }
 0x8b6   : > { %v1447_v28 = vpop.eup %1446 }
 0x8b7   : > { %v881_v30 = vmul.f32 %v1447_v28, %v873_v21 }
 0x8b9   : > { %v889_v32 = vmul.f32 %v1241_v29, %v881_v30 }
 0x8bb   : > { %v897_v33 = vadd.f32 %v1242_v31, %v889_v32 }
 0x8bd   : > { %v898_v34 = vpack.c.bf16 %v897_v33, %v897_v33 }
 0x8bf   : > { %1309 = vmatmul.mubr.msk.bf16.vlgmr.msra.gmra.mrb[4].mxu1 %vm489_vm0, %v898_v34 }
 0x992   : > { %v967_v40 = vpop.f32.mrb[4].mxu1 }
 0x993   : > { %v968_v41 = vadd.f32 %v1244_v39, %v967_v40  ;;  %v1310_v42 = vpop.f32.mrb[5].mxu1 }
 0x994   : > { %v970_v43 = vpop.f32.mrb[6].mxu1 }
 0x995   : > { %v974_v44 = vmul.f32 0.70710677, %v968_v41  ;;  %v1311_v45 = vpop.f32.mrb[7].mxu1  ;;  %v973_v3 = vmul.f32 0.5, %v968_v41 }
 0x997   : > { %v975_v46 = vand.u32 2147483647, %v974_v44  ;;  %vm995_vm9 = vcmp.lt.f32.partialorder %v974_v44, 0.0 }
 0x999   : > { %v976_v47 = vmul.f32 0.3275911, %v975_v46  ;;  %v989_v8 = vsub.f32 0.0, %v975_v46 }
 0x99b   : > { %v977_v48 = vadd.f32 1.0, %v976_v47  ;;  %v990_v50 = vmul.f32 %v989_v8, %v975_v46 }
 0x99d   : > { %1448 = vrcp.f32 %v977_v48  ;;  %v991_v53 = vmul.f32 1.442695, %v990_v50 }
 0x99f   : > { %1450 = vpow2.f32 %v991_v53 }
 0x9a7   : > { %v1449_v49 = vpop.eup %1448 }
 0x9a8   : > { %v980_v51 = vmul.f32 1.0614054, %v1449_v49 }
 0x9a9   : > { %v1451_v61 = vpop.eup %1450 }
 0x9aa   : > { %v981_v52 = vadd.f32 -1.4531521, %v980_v51 }
 0x9ac   : > { %v982_v54 = vmul.f32 %v1449_v49, %v981_v52 }
 0x9ae   : > { %v983_v55 = vadd.f32 1.4214138, %v982_v54 }
 0x9b0   : > { %v984_v56 = vmul.f32 %v1449_v49, %v983_v55 }
 0x9b2   : > { %v985_v57 = vadd.f32 -0.28449672, %v984_v56 }
 0x9b4   : > { %v986_v58 = vmul.f32 %v1449_v49, %v985_v57 }
 0x9b6   : > { %v987_v59 = vadd.f32 0.2548296, %v986_v58 }
 0x9b8   : > { %v988_v60 = vmul.f32 %v1449_v49, %v987_v59 }
 0x9ba   : > { %v993_v62 = vmul.f32 %v1451_v61, %v988_v60 }
 0x9bc   : > { %v994_v63 = vsub.f32 1.0, %v993_v62 }
 0x9be   : > { %v996_v1 = vsub.f32 0.0, %v994_v63 }
 0x9c0   : > { %v997_v2 = vsel %vm995_vm9, %v996_v1, %v994_v63 }
 0x9c1   : > { %v998_v4 = vadd.f32 1.0, %v997_v2 }
 0x9c3   : > { %v999_v5 = vmul.f32 %v998_v4, %v973_v3 }
 0x9c5   : > { %v1000_v6 = vpack.c.bf16 %v999_v5, %v999_v5 }
 0x9c7   : > { %1321 = vmatmul.mubr.msk.bf16.vlgmr.msra.gmra.mrb[0].mxu0 %vm1033_vm10, %v1000_v6 }
 0xa9a   : > { %v1071_v10 = vpop.f32.mrb[0].mxu0 }
 0xa9b   : > { %v1077_v11 = vadd.f32 %v1071_v10, %v906_v9  ;;  %v1322_v12 = vpop.f32.mrb[1].mxu0 }
 0xa9c   : > { %v1074_v13 = vpop.f32.mrb[2].mxu0 }
 0xa9d   : > { %1078 = vst.msk [vmem:[%s482_s17] sm:$0xff] %vm489_vm0, %v1077_v11  ;;  %v1323_v14 = vpop.f32.mrb[3].mxu0 }
 0xa9e   : > { %1577 = shalt.err (!%p1574_p0)
}
 0xa9f   : > { %s1578_s15 = scalar_lea.hbm %s2036_s24, 128  ;;  %s1582_s20 = scalar_lea.hbm %s2126_s14, 256 }
 0xaa0   : > { %p1579_p6 = scmp.ne.s32.totalorder %s2036_s24, %s1578_s15  ;;  %p1583_p12 = scmp.lt.u32.totalorder %s2036_s24, %s2126_s14 }
 0xaa1   : > { %p1584_p10 = scmp.lt.u32.totalorder %s1582_s20, %s1578_s15  ;;  %p1586_p3 = scmp.lt.u32.totalorder %s1578_s15, %s2036_s24 }
 0xaa2   : > { %p1580_p5 = pnand %p1579_p6, %p2127_p4 }
 0xaa3   : > { %p1585_p2 = por %p1584_p10, %p1583_p12 }
 0xaa4   : > { %p1581_p9 = pneg %p1580_p5 }
 0xaa5   : > { %p1587_p7 = por %p1586_p3, %p1585_p2 }
 0xaa7   : > { %p1588_p8 = pnand %p1587_p7, %p1581_p9 }
 0xaa9   : > { %1591 = shalt.err (!%p1588_p8)
}
 0xaaa   : > { %1340 = dma.vmem_to_hbm [thread:$0]  (%p2127_p4), %s2038_s25, 128, %s2036_s24, %s1080_s29  }
 0xaab PF: > { %s2128_s21 = sld [smem:[#allocation20_spill]]  ;;  %s2129_s27 = sld [smem:[#allocation18_spill]] }
 0xaac   : > { %s2130_s13 = sld [smem:[#allocation23_spill]] }
 0xab1   : > { %p1367_p11 = scmp.ge.s32.totalorder %s2128_s21, 2  ;;  %s1105_s16 = sand.u32 1, %s2129_s27  }
 0xab2   : > { %p2131_p13 = scmp.ne.s32.totalorder %s2130_s13, 0  ;;  %s1106_s28 = scalar_lea.sflag [#allocation7], %s1105_s16 }
 0xab4   : > { %p1356_p1 = pnand %p1367_p11, %p2131_p13 }
 0xab6   : > { %1625 = dma.done.wait (!%p1356_p1), %s1106_s28, 128  }
 0xab7   : > { %1627 = vsyncadd (!%p1356_p1), %s1106_s28, 4294967168  ;;  %s2132_s28 = sld [smem:[#allocation21_spill]]  ;;  %s2133_s19 = sld [smem:[#allocation19_spill]] }
 0xab8   : > { %s2134_s27 = sld [smem:[#allocation22_spill]]  ;;  %s2135_s25 = smov %s1634_s26 }
 0xabd   : > { %p26_p0 = scmp.ge.s32.totalorder %s2132_s28, 4   ;;  %s2136_s26 = smov %s2133_s19 }
 0xabf   :  { %28 = sbr.rel (!%p26_p0) target bundleno = 8 (0x8), region = 160 }
 0xac6   :  { %1111 = vsyncpa [#allocation6], 1 }
 0xac7   :  { %1113 = vsyncpa [#allocation6 + $0x1], 1 }
 0xac8   :  { %1114 = vsyncpa [#allocation9], 1 }
 0xac9   :  { %1115 = vsyncpa [#allocation12], 1 }
 0xaca   :  { %1116 = vsyncpa [#allocation7], 1 }
 0xacb   :  { %1118 = vsyncpa [#allocation7 + $0x1], 1 }

// kernel: tpu_custom_call.1
= control target key start
LH: loop header
LB: loop body
LE: loop exit
PB: predicated region body
PF: predicated region fallthrough
CT: control target
= control target key end

     0   :  { %s2083_s0 = inlined_call_operand.vmem [shape: f32[2,8,32], index: 0, kind: input, shape index: {}]   ;;  %s2084_s1 = inlined_call_operand.vmem [shape: f32[1,32], index: 1, kind: input, shape index: {}]   ;;  %s2085_s2 = inlined_call_operand.vmem [shape: f32[1,32], index: 2, kind: input, shape index: {}]   ;;  %s2086_s3 = inlined_call_operand.vmem [shape: bf16[32,96], index: 3, kind: input, shape index: {}]   ;;  %s2087_s4 = inlined_call_operand.hbm [shape: f32[1,96], index: 4, kind: input, shape index: {}]   ;;  %s2088_s5 = inlined_call_operand.vmem [shape: bf16[32,32], index: 5, kind: input, shape index: {}]   ;;  %s2089_s6 = inlined_call_operand.hbm [shape: f32[1,32], index: 6, kind: input, shape index: {}]   ;;  %s2090_s7 = inlined_call_operand.hbm [shape: f32[1,32], index: 7, kind: input, shape index: {}]   ;;  %s2091_s8 = inlined_call_operand.hbm [shape: f32[1,32], index: 8, kind: input, shape index: {}]   ;;  %s2092_s9 = inlined_call_operand.vmem [shape: bf16[32,64], index: 9, kind: input, shape index: {}]   ;;  %s2093_s10 = inlined_call_operand.vmem [shape: f32[1,64], index: 10, kind: input, shape index: {}]   ;;  %s2094_s11 = inlined_call_operand.vmem [shape: bf16[64,32], index: 11, kind: input, shape index: {}]   ;;  %s2095_s12 = inlined_call_operand.vmem [shape: f32[1,32], index: 12, kind: input, shape index: {}]   ;;  %s2096_s13 = inlined_call_operand.hbm [shape: f32[2,8,32], index: 13, kind: output, shape index: {}]  }
   0x1   :  { %2107 = sst [smem:[#allocation24_spill]] %s2096_s13 }
   0x2   :  { %18 = vsyncpa [#allocation6], 0 }
   0x3   :  { %19 = vsyncpa [#allocation9], 0 }
   0x4   :  { %20 = vsyncpa [#allocation12], 0 }
   0x5   :  { %21 = vsyncpa [#allocation7], 0 }
   0x6   :  { %23 = vsyncpa [#allocation7 + $0x1], 0  ;;  %s1741_s25 = smov 0   ;;  %s1743_s26 = smov 0  }
   0x7   :  { %s1745_s27 = smov 0   ;;  %s1747_s28 = smov 0  }
   0x8 LB: > { %2108 = sst [smem:[#allocation18_spill]] %s1630_s25  ;;  %s1762_s29 = sadd.s32 4294967295, %s1642_s28   ;;  %s1642_s28 = sphi %s1747_s28, %s2132_s28   ;;  %s1638_s27 = sphi %s1745_s27, %s2134_s27   ;;  %s1634_s26 = sphi %s1743_s26, %s2136_s26   ;;  %s1630_s25 = sphi %s1741_s25, %s2135_s25  }
   0x9   : > { %2109 = sst [smem:[#allocation19_spill]] %s1638_s27  ;;  %s1208_s30 = sadd.s32 4294967294, %s1642_s28  }
   0xa   : > { %2110 = sst [smem:[#allocation20_spill]] %s1642_s28  ;;  %s1766_s14 = sadd.s32 1, %s1642_s28  }
   0xb   : > { %2111 = sst [smem:[#allocation21_spill]] %s1766_s14  ;;  %s314_s15 = sadd.s32 1, %s1638_s27 }
   0xc   : > { %s311_s16 = ssub.s32 %s1642_s28, %s1766_s14  ;;  %p324_p0 = scmp.ne.s32.totalorder %s1638_s27, %s1634_s26 }
   0xd   : > { %p312_p1 = scmp.eq.s32.totalorder %s311_s16, 0  ;;  %p325_p2 = scmp.eq.s32.totalorder %s1762_s29, 1 }
   0xe   : > { %p330_p3 = scmp.ne.s32.totalorder %s1634_s26, %s1630_s25  ;;  %p331_p4 = scmp.eq.s32.totalorder %s1208_s30, 1 }
   0xf   : > { %s1777_s17 = scalar_select %p312_p1, %s1638_s27, %s314_s15  }
  0x10   : > { %p1779_p5 = por %p325_p2, %p324_p0  ;;  %p1783_p6 = por %p331_p4, %p330_p3 }
  0x11   : > { %2112 = sst [smem:[#allocation22_spill]] %s1777_s17  ;;  %p1209_p7 = scmp.ge.s32.totalorder %s1642_s28, 1 }
  0x12   : > { %s2113_s18 = scalar_select %p1779_p5, 1, 0 }
  0x13   : > { %s2114_s19 = scalar_select %p1783_p6, 1, 0 }
  0x14   : > { %p338_p8 = scmp.lt.s32.totalorder %s1642_s28, 3  ;;  %p2102_p9 = scmp.eq.s32.totalorder %s1762_s29, 0 }
  0x15   : > { %2115 = sst [smem:[#allocation23_spill]] %s2114_s19  ;;  %s1648_s21 = smov [#allocation8]  }
  0x16   : > { %p1790_p10 = pnand %p1209_p7, %p338_p8  ;;  %s374_s22 = sshll.u32 %s1648_s21, 4  ;;  %s375_s22 = int_to_ptr.vmem [resolvable:$true] %s374_s22 }
  0x17   : > { %s1649_s23 = smov [#allocation5]   ;;  %s1650_s15 = smov [#allocation10]  }
  0x18   : > { %s2116_s20 = scalar_select %p1790_p10, 1, 0 }
  0x19   : > { %p1342_p11 = pneg %p1790_p10  ;;  %s360_s24 = sshll.u32 %s1649_s23, 4  ;;  %s1802_s24 = int_to_ptr.vmem [resolvable:$true] %s360_s24 }
  0x1a   : > { %s385_s16 = sshll.u32 %s1650_s15, 4  ;;  %s1452_s21 = scalar_lea.hbm %s2089_s6, 16  ;;  %s1804_s16 = int_to_ptr.vmem [resolvable:$true] %s385_s16 }
  0x1b   : > { %p1798_p12 = pnand %p2102_p9, %p1342_p11  ;;  %p1453_p13 = scmp.ne.s32.totalorder %s2089_s6, %s1452_s21 }
  0x1c   : > { %p1459_p3 = scmp.lt.u32.totalorder %s1452_s21, %s2089_s6 }
  0x1d   : > { %p1814_p0 = pneg %p1798_p12 }
  0x1f   : > { %p1455_p1 = pnand %p1814_p0, %p1453_p13 }
  0x21   : > { %p1456_p2 = pneg %p1455_p1 }
  0x23   : > { %p1461_p4 = pnand %p1459_p3, %p1456_p2 }
  0x25   : > { %1464 = shalt.err (!%p1461_p4)
}
  0x26   : > { %s1465_s27 = scalar_lea.vmem %s375_s22, 16  ;;  %s1472_s14 = scalar_lea.vmem %s375_s22, 32 }
  0x27   : > { %p1466_p7 = scmp.ne.s32.totalorder %s375_s22, %s1465_s27  ;;  %p1473_p9 = scmp.lt.s32.totalorder %s375_s22, %s375_s22 }
  0x28   : > { %p1474_p6 = scmp.lt.s32.totalorder %s1472_s14, %s1465_s27 }
  0x29   : > { %p1468_p8 = pnand %p1466_p7, %p1814_p0 }
  0x2a   : > { %p1475_p5 = por %p1474_p6, %p1473_p9 }
  0x2b   : > { %p1469_p11 = pneg %p1468_p8 }
  0x2d   : > { %p1476_p10 = pnand %p1475_p5, %p1469_p11 }
  0x2f   : > { %1479 = shalt.err (!%p1476_p10)
}
  0x30   : > { %1348 = dma.hbm_to_vmem [thread:$0]  (!%p1798_p12), %s2089_s6, 16, %s375_s22, [#allocation9]  }
  0x31   : > { %s1480_s15 = scalar_lea.hbm %s2087_s4, 16 }
  0x32   : > { %p1481_p13 = scmp.ne.s32.totalorder %s2087_s4, %s1480_s15  ;;  %p1487_p5 = scmp.lt.u32.totalorder %s1480_s15, %s2087_s4 }
  0x34   : > { %p1483_p1 = pnand %p1481_p13, %p1814_p0 }
  0x36   : > { %p1484_p6 = pneg %p1483_p1 }
  0x38   : > { %p1489_p9 = pnand %p1487_p5, %p1484_p6 }
  0x3a   : > { %1492 = shalt.err (!%p1489_p9)
}
  0x3b   : > { %s1493_s22 = scalar_lea.vmem %s1802_s24, 16  ;;  %s1500_s13 = scalar_lea.vmem %s1802_s24, 32 }
  0x3c   : > { %p1494_p10 = scmp.ne.s32.totalorder %s1802_s24, %s1493_s22  ;;  %p1501_p4 = scmp.lt.s32.totalorder %s1802_s24, %s1802_s24 }
  0x3d   : > { %p1502_p7 = scmp.lt.s32.totalorder %s1500_s13, %s1493_s22 }
  0x3e   : > { %p1496_p2 = pnand %p1494_p10, %p1814_p0 }
  0x3f   : > { %p1503_p8 = por %p1502_p7, %p1501_p4 }
  0x40   : > { %p1497_p3 = pneg %p1496_p2 }
  0x42   : > { %p1504_p11 = pnand %p1503_p8, %p1497_p3 }
  0x44   : > { %1507 = shalt.err (!%p1504_p11)
}
  0x45   : > { %1345 = dma.hbm_to_vmem [thread:$0]  (!%p1798_p12), %s2087_s4, 16, %s1802_s24, [#allocation6]  }
  0x46   : > { %s1508_s21 = scalar_lea.hbm %s2090_s7, 16 }
  0x47   : > { %p1509_p13 = scmp.ne.s32.totalorder %s2090_s7, %s1508_s21  ;;  %p1515_p5 = scmp.lt.u32.totalorder %s1508_s21, %s2090_s7 }
  0x49   : > { %p1511_p1 = pnand %p1509_p13, %p1814_p0 }
  0x4b   : > { %p1512_p6 = pneg %p1511_p1 }
  0x4d   : > { %p1517_p9 = pnand %p1515_p5, %p1512_p6 }
  0x4f   : > { %1520 = shalt.err (!%p1517_p9)
}
  0x50   : > { %s1521_s24 = scalar_lea.vmem %s1804_s16, 16  ;;  %s1528_s13 = scalar_lea.vmem %s1804_s16, 32 }
  0x51   : > { %p1522_p10 = scmp.ne.s32.totalorder %s1804_s16, %s1521_s24  ;;  %p1529_p4 = scmp.lt.s32.totalorder %s1804_s16, %s1804_s16 }
  0x52   : > { %p1530_p7 = scmp.lt.s32.totalorder %s1528_s13, %s1521_s24 }
  0x53   : > { %p1524_p2 = pnand %p1522_p10, %p1814_p0 }
  0x54   : > { %p1531_p8 = por %p1530_p7, %p1529_p4 }
  0x55   : > { %p1525_p3 = pneg %p1524_p2 }
  0x57   : > { %p1532_p11 = pnand %p1531_p8, %p1525_p3 }
  0x59   : > { %1535 = shalt.err (!%p1532_p11)
}
  0x5a   : > { %1351 = dma.hbm_to_vmem [thread:$0]  (!%p1798_p12), %s2090_s7, 16, %s1804_s16, [#allocation9]  }
  0x5b   : > { %s1651_s19 = smov [#allocation11]   ;;  %s1536_s27 = scalar_lea.hbm %s2091_s8, 16 }
  0x5c   : > { %s396_s25 = sshll.u32 %s1651_s19, 4  ;;  %p1537_p13 = scmp.ne.s32.totalorder %s2091_s8, %s1536_s27  ;;  %s397_s25 = int_to_ptr.vmem [resolvable:$true] %s396_s25 }
  0x5d   : > { %p1543_p5 = scmp.lt.u32.totalorder %s1536_s27, %s2091_s8 }
  0x5e   : > { %p1539_p1 = pnand %p1537_p13, %p1814_p0 }
  0x60   : > { %p1540_p6 = pneg %p1539_p1 }
  0x62   : > { %p1545_p9 = pnand %p1543_p5, %p1540_p6 }
  0x64   : > { %1548 = shalt.err (!%p1545_p9)
}
  0x65   : > { %s1549_s16 = scalar_lea.vmem %s397_s25, 16  ;;  %s1556_s28 = scalar_lea.vmem %s397_s25, 32 }
  0x66   : > { %p1550_p10 = scmp.ne.s32.totalorder %s397_s25, %s1549_s16  ;;  %p1557_p4 = scmp.lt.s32.totalorder %s397_s25, %s397_s25 }
  0x67   : > { %p1558_p7 = scmp.lt.s32.totalorder %s1556_s28, %s1549_s16 }
  0x68   : > { %p1552_p2 = pnand %p1550_p10, %p1814_p0 }
  0x69   : > { %p1559_p8 = por %p1558_p7, %p1557_p4 }
  0x6a   : > { %p1553_p3 = pneg %p1552_p2 }
  0x6c   : > { %p1560_p11 = pnand %p1559_p8, %p1553_p3 }
  0x6e   : > { %1563 = shalt.err (!%p1560_p11)
}
  0x6f   : > { %1354 = dma.hbm_to_vmem [thread:$0]  (!%p1798_p12), %s2091_s8, 16, %s397_s25, [#allocation12]  }
  0x70   : > { %p2119_p13 = scmp.ne.s32.totalorder %s2116_s20, 0 }
  0x71   : > { %p2120_p1 = scmp.eq.s32.totalorder (!%p2119_p13), %s1762_s29, 0 }
  0x72   : > { %428 = sbr.rel (%p2119_p13) target bundleno = 2731 (0xaab), region = 72 }
  0x79   : > { %1613 = dma.done.wait (%p2120_p1), [#allocation6], 16   ;;  %p2121_p0 = pmov %p2120_p1 }
  0x7b   : > { %1615 = vsyncadd (%p2121_p0), [#allocation6], 4294967280  ;;  %p2122_p6 = pmov %p2121_p0 }
  0x7c   : > { %p2123_p5 = pmov %p2121_p0 }
  0x7d   : > { %1617 = dma.done.wait (%p2122_p6), [#allocation9], 32  }
  0x7e   : > { %1619 = vsyncadd (%p2123_p5), [#allocation9], 4294967264  ;;  %p2124_p9 = pmov %p2121_p0 }
  0x7f   : > { %p2125_p12 = pmov %p2121_p0 }
  0x80   : > { %1621 = dma.done.wait (%p2124_p9), [#allocation12], 16  }
  0x81   : > { %1623 = vsyncadd (%p2125_p12), [#allocation12], 4294967280  ;;  %p483_p10 = scmp.lt.s32.totalorder %s1762_s29, 1  ;;  %vm489_vm0 = vcmask 261120   ;;  %s480_s15 = sand.u32 1, %s1634_s26   ;;  %v1430_v7 = vld [vmem:[%s2086_s3] sm:$0xff]  }
  0x82   : > { %s1927_s22 = sshll.u32 %s480_s15, 3  ;;  %v1652_v8 = vmov 0.0   ;;  %vm1653_vm1 = vmmov 0   ;;  %v1431_v9 = vld [vmem:[%s2086_s3 + $0x8] sm:$0xff]   ;;  %v1222_v14 = vld [vmem:[%s2084_s1] ss:$0 sm:$0xff] }
  0x83   : > { %s484_s20 = scalar_select %p483_p10, %s1762_s29, 1  ;;  %1276 = vmatprep.subr.bf16.mxu0 %v1652_v8  ;;  %1280 = vmatprep.mubr.msk.bf16.mxu0 %vm1653_vm1, %v1652_v8  ;;  %v1223_v16 = vld [vmem:[%s2085_s2] ss:$0 sm:$0xff]  ;;  %v1224_v20 = vld [vmem:[#allocation5] ss:$0 sm:$0xff]  ;;  %vm588_vm2 = vcmask 60416  }
  0x84   : > { %1277 = vmatpush3.bf16.msra.mxu0 %v1430_v7  ;;  %s1656_s23 = smov 48   ;;  %s1657_s25 = smov 112  }
  0x85   : > { %s1221_s30 = sshll.u32 %s484_s20, 3  ;;  %1278 = vmatprep.subr.bf16.mxu0 %v1652_v8  ;;  %s1654_s20 = smov 104  }
  0x86   : > { %s486_s21 = scalar_lea.vmem %s2083_s0, %s1221_s30  ;;  %s1655_s30 = smov 120  }
  0x87   : > { %v1915_v0 = vld [vmem:[%s486_s21] sm:$0xff]  ;;  %s1658_s21 = smov 96   ;;  %s1659_s27 = smov 88  }
  0x88   : > { %v490_v1 = vsel %vm489_vm0, %v1915_v0, 0.0  ;;  %1279 = vmatpush3.bf16.msra.mxu0 %v1431_v9  ;;  %s1660_s14 = smov 80   ;;  %s1661_s24 = smov 72  }
  0x89   : > { %491 = vadd.xlane.f32.xlu0 %v490_v1  ;;  %s1662_s13 = smov 64   ;;  %s1663_s16 = smov 56  }
  0x8a   : > { %s1664_s28 = smov 40   ;;  %s482_s17 = scalar_lea.vmem [#allocation13], %s1927_s22 }
  0x8b   : > { %s1956_s19 = smov 0  }
 0x116   : > { %v492_v2 = vpop.xlane.xlu0 %491 }
 0x117   : > { %v494_v3 = vmul.f32 0.03125, %v492_v2 }
 0x119   : > { %v495_v4 = vsub.f32 %v1915_v0, %v494_v3 }
 0x11b   : > { %v496_v5 = vmul.f32 %v495_v4, %v495_v4 }
 0x11d   : > { %v497_v6 = vsel %vm489_vm0, %v496_v5, 0.0 }
 0x11e   : > { %498 = vadd.xlane.f32.xlu0 %v497_v6 }
 0x1ab   : > { %v499_v10 = vpop.xlane.xlu0 %498 }
 0x1ac   : > { %v500_v11 = vmul.f32 0.03125, %v499_v10 }
 0x1ae   : > { %v501_v12 = vadd.f32 1e-05, %v500_v11 }
 0x1b0   : > { %1432 = vrsqrt.f32 %v501_v12 }
 0x1ba   : > { %v1433_v13 = vpop.eup %1432 }
 0x1bb   : > { %v503_v15 = vmul.f32 %v1433_v13, %v495_v4 }
 0x1bd   : > { %v511_v17 = vmul.f32 %v1222_v14, %v503_v15 }
 0x1bf   : > { %v519_v18 = vadd.f32 %v1223_v16, %v511_v17 }
 0x1c1   : > { %v520_v19 = vpack.c.bf16 %v519_v18, %v519_v18 }
 0x1c3   : > { %1281 = vmatmul.mubr.msk.bf16.vlgmr.msra.gmra.mrb[0].mxu0 %vm489_vm0, %v520_v19 }
 0x296   : > { %v581_v21 = vpop.f32.mrb[0].mxu0 }
 0x297   : > { %v582_v22 = vadd.f32 %v1224_v20, %v581_v21  ;;  %v1282_v23 = vpop.f32.mrb[1].mxu0 }
 0x298   : > { %v584_v24 = vpop.f32.mrb[2].mxu0 }
 0x299   : > { %v587_v25 = vpack.c.bf16 %v582_v22, %v582_v22  ;;  %v1283_v26 = vpop.f32.mrb[3].mxu0 }
 0x29b   : > { %603 = vrot.lane.b32.xlu0 %v587_v25, %s1654_s20  ;;  %593 = vrot.lane.b32.xlu1 %v587_v25, %s1655_s30  ;;  %589 = vst.msk [vmem:[#allocation2] sm:$0xf] %vm588_vm2, %v587_v25 }
 0x29f   : > { %638 = vrot.lane.b32.xlu0 %v587_v25, %s1656_s23  ;;  %598 = vrot.lane.b32.xlu1 %v587_v25, %s1657_s25 }
 0x2a3   : > { %608 = vrot.lane.b32.xlu1 %v587_v25, %s1658_s21 }
 0x2a7   : > { %613 = vrot.lane.b32.xlu1 %v587_v25, %s1659_s27 }
 0x2ab   : > { %618 = vrot.lane.b32.xlu1 %v587_v25, %s1660_s14 }
 0x2af   : > { %623 = vrot.lane.b32.xlu1 %v587_v25, %s1661_s24 }
 0x2b3   : > { %628 = vrot.lane.b32.xlu1 %v587_v25, %s1662_s13 }
 0x2b7   : > { %633 = vrot.lane.b32.xlu1 %v587_v25, %s1663_s16 }
 0x2bb   : > { %643 = vrot.lane.b32.xlu1 %v587_v25, %s1664_s28 }
 0x30d   : > { %v604_v27 = vpop.permute.xlu0 %603  ;;  %v594_v28 = vpop.permute.xlu1 %593 }
 0x30e   : > { %607 = vst.msk [vmem:[#allocation2 + $0xc] sm:$0xf] %vm588_vm2, %v604_v27  ;;  %597 = vst.msk [vmem:[#allocation2 + $0x4] sm:$0xf] %vm588_vm2, %v594_v28 }
 0x311   : > { %v639_v29 = vpop.permute.xlu0 %638  ;;  %v599_v30 = vpop.permute.xlu1 %598 }
 0x312   : > { %642 = vst.msk [vmem:[#allocation2 + $0x28] sm:$0xf] %vm588_vm2, %v639_v29  ;;  %602 = vst.msk [vmem:[#allocation2 + $0x8] sm:$0xf] %vm588_vm2, %v599_v30 }
 0x315   : > { %v609_v31 = vpop.permute.xlu1 %608 }
 0x316   : > { %612 = vst.msk [vmem:[#allocation2 + $0x10] sm:$0xf] %vm588_vm2, %v609_v31 }
 0x319   : > { %v614_v32 = vpop.permute.xlu1 %613 }
 0x31a   : > { %617 = vst.msk [vmem:[#allocation2 + $0x14] sm:$0xf] %vm588_vm2, %v614_v32 }
 0x31d   : > { %v619_v33 = vpop.permute.xlu1 %618 }
 0x31e   : > { %622 = vst.msk [vmem:[#allocation2 + $0x18] sm:$0xf] %vm588_vm2, %v619_v33 }
 0x321   : > { %v624_v34 = vpop.permute.xlu1 %623 }
 0x322   : > { %627 = vst.msk [vmem:[#allocation2 + $0x1c] sm:$0xf] %vm588_vm2, %v624_v34 }
 0x325   : > { %v629_v35 = vpop.permute.xlu1 %628 }
 0x326   : > { %632 = vst.msk [vmem:[#allocation2 + $0x20] sm:$0xf] %vm588_vm2, %v629_v35 }
 0x329   : > { %v634_v36 = vpop.permute.xlu1 %633 }
 0x32a   : > { %637 = vst.msk [vmem:[#allocation2 + $0x24] sm:$0xf] %vm588_vm2, %v634_v36 }
 0x32d   : > { %v644_v37 = vpop.permute.xlu1 %643 }
 0x32e   : > { %647 = vst.msk [vmem:[#allocation2 + $0x2c] sm:$0xf] %vm588_vm2, %v644_v37 }
 0x32f LB: >> { %v1665_v38 = vmov 0.0   ;;  %vm1666_vm3 = vmmov 0   ;;  %s1229_s20 = sshll.u32 %s1646_s19, 2  ;;  %vm665_vm4 = vcmask 64512   ;;  %vm727_vm5 = vcmask 1043456   ;;  %s653_s19 = sadd.s32 1, %s1646_s19   ;;  %s1646_s19 = sphi %s1956_s19, %s653_s19  }
 0x330   : >> { %1284 = vmatprep.subr.bf16.mxu0 %v1665_v38  ;;  %1286 = vmatprep.mubr.msk.bf16.mxu0 %vm1666_vm3, %v1665_v38  ;;  %s655_s30 = scalar_lea.vmem [#allocation2], %s1229_s20  ;;  %s773_s23 = scalar_lea.vmem [#allocation3], %s1229_s20 }
 0x331   : >> { %1290 = vmatprep.subr.bf16.mxu1 %v1665_v38  ;;  %1292 = vmatprep.mubr.msk.bf16.mxu1 %vm1666_vm3, %v1665_v38  ;;  %p650_p2 = scmp.ge.s32.totalorder %s653_s19, 4  }
 0x332   : > { %s1667_s25 = smov (%p650_p2), 8   ;;  %s1668_s21 = smov (%p650_p2), 24   ;;  %v1438_v4 = vld [vmem:[%s2088_s5] sm:$0xff] (%p650_p2)   ;;  %v1439_v5 = vld [vmem:[%s2088_s5 + $0x8] sm:$0xff] (%p650_p2)   ;;  %vm783_vm6 = vcmask (%p650_p2), 126016   ;;  %vm791_vm7 = vcmask (%p650_p2), 191616  }
 0x333   : > { %s1669_s16 = smov (%p650_p2), 16   ;;  %vm799_vm8 = vcmask (%p650_p2), 257216   ;;  %v1237_v11 = vld [vmem:[#allocation8] ss:$0 sm:$0xff] (%p650_p2)  ;;  %v1241_v29 = vld [vmem:[#allocation10] ss:$0 sm:$0xff] (%p650_p2) }
 0x334   : > { %v1440_v24 = vld [vmem:[%s2092_s9] sm:$0xff] (%p650_p2)   ;;  %v1242_v31 = vld [vmem:[#allocation11] ss:$0 sm:$0xff] (%p650_p2)  ;;  %v1444_v37 = vld [vmem:[%s2094_s11 + $0x10] sm:$0xff] (%p650_p2)   ;;  %vm1033_vm10 = vcmask (%p650_p2), 523264   ;;  %s2126_s14 = sld [smem:[#allocation24_spill]] (%p650_p2) }
 0x335   : >> { %v1231_v39 = vld [vmem:[%s655_s30 + $0x10] sm:$0xf]  ;;  %v656_v41 = vld [vmem:[%s655_s30] sm:$0xf]  ;;  %v1443_v36 = vld [vmem:[%s2094_s11 + $0x8] sm:$0xff] (%p650_p2)   ;;  %p2127_p4 = scmp.ne.s32.totalorder (%p650_p2), %s2113_s18, 0 }
 0x336   : >> { %v670_v40 = vsel %vm665_vm4, %v1231_v39, 0  ;;  %v1233_v52 = vld [vmem:[%s655_s30 + $0x20] sm:$0xf]  ;;  %v1445_v38 = vld [vmem:[%s2094_s11 + $0x18] sm:$0xff] (%p650_p2)  }
 0x337   : >> { %1285 = vmatpush3.bf16.xpose.msra.mxu0 %v670_v40  ;;  %v729_v53 = vsel %vm727_vm5, %v1233_v52, 0  ;;  %v1442_v35 = vld [vmem:[%s2094_s11] sm:$0xff] (%p650_p2)  }
 0x338   : >> { %1291 = vmatpush3.bf16.msra.mxu1 %v729_v53  ;;  %1312 = vmatprep.subr.bf16.mxu0 (%p650_p2), %v1652_v8  ;;  %v1244_v39 = vld [vmem:[%s2093_s10] ss:$0 sm:$0xff] (%p650_p2) }
 0x339   : > { %1296 = vmatprep.subr.bf16.mxu1 (%p650_p2), %v1652_v8 }
 0x33e   : >> { %1287 = vmatmul.mubr.msk.bf16.vlgmr.msra.gmra.mrb[0].mxu0 %vm665_vm4, %v656_v41 }
 0x33f   : > { %1320 = vmatprep.mubr.msk.bf16.mxu0 (%p650_p2), %vm1653_vm1, %v1652_v8  ;;  %1313 = vmatpush3.bf16.msra.mxu0 (%p650_p2), %v1442_v35 }
 0x340   : > { %1314 = vmatprep.subr.bf16.mxu0 (%p650_p2), %v1652_v8 }
 0x343   : > { %1315 = vmatpush3.bf16.msra.mxu0 (%p650_p2), %v1443_v36 }
 0x344   : > { %1316 = vmatprep.subr.bf16.mxu0 (%p650_p2), %v1652_v8 }
 0x347   : > { %1317 = vmatpush3.bf16.msra.mxu0 (%p650_p2), %v1444_v37 }
 0x348   : > { %1318 = vmatprep.subr.bf16.mxu0 (%p650_p2), %v1652_v8 }
 0x34b   : > { %1319 = vmatpush3.bf16.msra.mxu0 (%p650_p2), %v1445_v38 }
 0x411   : >> { %v706_v42 = vpop.f32.mrb[0].mxu0 }
 0x412   : >> { %v1288_v43 = vpop.f32.mrb[1].mxu0  ;;  %v712_v44 = vsel %vm665_vm4, %v706_v42, -inf }
 0x413   : >> { %713 = vmax.xlane.f32.xlu0 %v712_v44  ;;  %v709_v45 = vpop.f32.mrb[2].mxu0 }
 0x414   : >> { %v1289_v46 = vpop.f32.mrb[3].mxu0 }
 0x4a0   : >> { %v714_v47 = vpop.xlane.xlu0 %713 }
 0x4a1   : >> { %v715_v48 = vsub.f32 %v706_v42, %v714_v47 }
 0x4a3   : >> { %v716_v49 = vmul.f32 1.442695, %v715_v48 }
 0x4a5   : >> { %1434 = vpow2.f32 %v716_v49 }
 0x4af   : >> { %v1435_v50 = vpop.eup %1434 }
 0x4b0   : >> { %v718_v51 = vsel %vm665_vm4, %v1435_v50, 0.0 }
 0x4b1   : >> { %719 = vadd.xlane.f32.xlu0 %v718_v51 }
 0x53e   : >> { %v720_v54 = vpop.xlane.xlu0 %719 }
 0x53f   : >> { %1436 = vrcp.f32 %v720_v54 }
 0x549   : >> { %v1437_v55 = vpop.eup %1436 }
 0x54a   : >> { %v722_v56 = vmul.f32 %v1437_v55, %v1435_v50 }
 0x54c   : >> { %v723_v57 = vpack.c.bf16 %v722_v56, %v722_v56 }
 0x54e   : >> { %1293 = vmatmul.mubr.msk.bf16.vlgmr.msra.gmra.mrb[0].mxu1 %vm665_vm4, %v723_v57 }
 0x54f   : > { %1300 = vmatprep.mubr.msk.bf16.mxu1 (%p650_p2), %vm1653_vm1, %v1652_v8  ;;  %1297 = vmatpush3.bf16.msra.mxu1 (%p650_p2), %v1438_v4 }
 0x550   : > { %1298 = vmatprep.subr.bf16.mxu1 (%p650_p2), %v1652_v8 }
 0x553   : > { %1299 = vmatpush3.bf16.msra.mxu1 (%p650_p2), %v1439_v5 }
 0x554   : > { %1304 = vmatprep.subr.bf16.mxu1 (%p650_p2), %v1652_v8 }
 0x61e   : > { %652 = sbr.rel (!%p650_p2) target bundleno = 815 (0x32f), region = 149 }
 0x621   : >> { %v765_v58 = vpop.f32.mrb[0].mxu1 }
 0x622   : >> { %v771_v59 = vpack.c.bf16 %v765_v58, %v765_v58  ;;  %v1294_v60 = vpop.f32.mrb[1].mxu1 }
 0x623   : >> { %v768_v61 = vpop.f32.mrb[2].mxu1 }
 0x624   : >> { %774 = vst.msk [vmem:[%s773_s23] sm:$0xf] %vm588_vm2, %v771_v59  ;;  %v1295_v62 = vpop.f32.mrb[3].mxu1  ;;  %s1254_s23 = sshll.u32 (%p650_p2), %s1762_s29, 7  ;;  %s1080_s29 = scalar_lea.sflag (%p650_p2), [#allocation7], %s480_s15 }
 0x625   : > { %s2036_s24 = scalar_lea.hbm %s2126_s14, %s1254_s23 }
 0x62b   : > { %v778_v63 = vld [vmem:[#allocation3 + $0x4] sm:$0xf]  ;;  %v786_v1 = vld [vmem:[#allocation3 + $0x8] sm:$0xf]  ;;  %v794_v2 = vld [vmem:[#allocation3 + $0xc] sm:$0xf] }
 0x62c   : > { %780 = vrot.lane.b32.xlu0 %v778_v63, %s1667_s25  ;;  %v775_v3 = vld [vmem:[#allocation3] sm:$0xf]  ;;  %796 = vrot.lane.b32.xlu1 %v794_v2, %s1668_s21  ;;  %s1093_s25 = sshll.u32 %s482_s17, 4  ;;  %s2038_s25 = int_to_ptr.vmem [resolvable:$true] %s1093_s25 }
 0x62d   : > { %776 = vst.msk [vmem:[#allocation4] sm:$0xf] %vm588_vm2, %v775_v3  ;;  %s1564_s13 = scalar_lea.vmem %s2038_s25, 128 }
 0x62e   : > { %p1565_p3 = scmp.ne.s32.totalorder %s2038_s25, %s1564_s13 }
 0x630   : > { %788 = vrot.lane.b32.xlu0 %v786_v1, %s1669_s16  ;;  %p1566_p7 = pnand %p1565_p3, %p2127_p4  ;;  %s1670_s16 = smov [#allocation13]  }
 0x631   : > { %s1568_s28 = sshll.u32 %s1670_s16, 4  ;;  %s1569_s28 = int_to_ptr.vmem [resolvable:$false] %s1568_s28 }
 0x632   : > { %p1567_p8 = pneg %p1566_p7  ;;  %s1570_s19 = scalar_lea.vmem %s1569_s28, 256 }
 0x633   : > { %p1571_p11 = scmp.lt.s32.totalorder %s2038_s25, %s1569_s28  ;;  %p1572_p13 = scmp.lt.s32.totalorder %s1570_s19, %s1564_s13 }
 0x635   : > { %p1573_p1 = por %p1572_p13, %p1571_p11 }
 0x637   : > { %p1574_p0 = pnand %p1573_p1, %p1567_p8 }
 0x69e   : > { %v781_v6 = vpop.permute.xlu0 %780  ;;  %v797_v7 = vpop.permute.xlu1 %796 }
 0x69f   : > { %784 = vst.msk [vmem:[#allocation4] sm:$0xf] %vm783_vm6, %v781_v6 }
 0x6a2   : > { %v789_v9 = vpop.permute.xlu0 %788 }
 0x6a3   : > { %792 = vst.msk [vmem:[#allocation4] sm:$0xf] %vm791_vm7, %v789_v9 }
 0x6a4   : > { %800 = vst.msk [vmem:[#allocation4] sm:$0xf] %vm799_vm8, %v797_v7  ;;  %v1243_v7 = vld [vmem:[%s2095_s12] ss:$0 sm:$0xff] }
 0x6ab   : > { %v801_v10 = vld [vmem:[#allocation4] sm:$0xf] }
 0x6ac   : > { %1301 = vmatmul.mubr.msk.bf16.vlgmr.msra.gmra.mrb[0].mxu1 %vm489_vm0, %v801_v10 }
 0x6ad   : > { %1308 = vmatprep.mubr.msk.bf16.mxu1 %vm1653_vm1, %v1652_v8  ;;  %1305 = vmatpush3.bf16.msra.mxu1 %v1440_v24 }
 0x6ae   : > { %1306 = vmatprep.subr.bf16.mxu1 %v1652_v8 }
 0x77f   : > { %v862_v12 = vpop.f32.mrb[0].mxu1 }
 0x780   : > { %v863_v13 = vadd.f32 %v1237_v11, %v862_v12  ;;  %v1302_v14 = vpop.f32.mrb[1].mxu1 }
 0x781   : > { %v865_v15 = vpop.f32.mrb[2].mxu1 }
 0x782   : > { %v1994_v16 = vadd.f32 %v863_v13, %v1915_v0  ;;  %v1303_v17 = vpop.f32.mrb[3].mxu1  ;;  %v1441_v0 = vld [vmem:[%s2092_s9 + $0x8] sm:$0xff]  }
 0x783   : > { %1307 = vmatpush3.bf16.msra.mxu1 %v1441_v0 }
 0x784   : > { %v869_v18 = vsel %vm489_vm0, %v1994_v16, 0.0  ;;  %v906_v9 = vadd.f32 %v1243_v7, %v1994_v16 }
 0x785   : > { %870 = vadd.xlane.f32.xlu1 %v869_v18 }
 0x812   : > { %v871_v19 = vpop.xlane.xlu1 %870 }
 0x813   : > { %v872_v20 = vmul.f32 0.03125, %v871_v19 }
 0x815   : > { %v873_v21 = vsub.f32 %v1994_v16, %v872_v20 }
 0x817   : > { %v874_v22 = vmul.f32 %v873_v21, %v873_v21 }
 0x819   : > { %v875_v23 = vsel %vm489_vm0, %v874_v22, 0.0 }
 0x81a   : > { %876 = vadd.xlane.f32.xlu0 %v875_v23 }
 0x8a7   : > { %v877_v25 = vpop.xlane.xlu0 %876 }
 0x8a8   : > { %v878_v26 = vmul.f32 0.03125, %v877_v25 }
 0x8aa   : > { %v879_v27 = vadd.f32 1e-05, %v878_v26 }
 0x8ac   : > { %1446 = vrsqrt.f32 %v879_v27 }
 0x8b6   : > { %v1447_v28 = vpop.eup %1446 }
 0x8b7   : > { %v881_v30 = vmul.f32 %v1447_v28, %v873_v21 }
 0x8b9   : > { %v889_v32 = vmul.f32 %v1241_v29, %v881_v30 }
 0x8bb   : > { %v897_v33 = vadd.f32 %v1242_v31, %v889_v32 }
 0x8bd   : > { %v898_v34 = vpack.c.bf16 %v897_v33, %v897_v33 }
 0x8bf   : > { %1309 = vmatmul.mubr.msk.bf16.vlgmr.msra.gmra.mrb[4].mxu1 %vm489_vm0, %v898_v34 }
 0x992   : > { %v967_v40 = vpop.f32.mrb[4].mxu1 }
 0x993   : > { %v968_v41 = vadd.f32 %v1244_v39, %v967_v40  ;;  %v1310_v42 = vpop.f32.mrb[5].mxu1 }
 0x994   : > { %v970_v43 = vpop.f32.mrb[6].mxu1 }
 0x995   : > { %v974_v44 = vmul.f32 0.70710677, %v968_v41  ;;  %v1311_v45 = vpop.f32.mrb[7].mxu1  ;;  %v973_v3 = vmul.f32 0.5, %v968_v41 }
 0x997   : > { %v975_v46 = vand.u32 2147483647, %v974_v44  ;;  %vm995_vm9 = vcmp.lt.f32.partialorder %v974_v44, 0.0 }
 0x999   : > { %v976_v47 = vmul.f32 0.3275911, %v975_v46  ;;  %v989_v8 = vsub.f32 0.0, %v975_v46 }
 0x99b   : > { %v977_v48 = vadd.f32 1.0, %v976_v47  ;;  %v990_v50 = vmul.f32 %v989_v8, %v975_v46 }
 0x99d   : > { %1448 = vrcp.f32 %v977_v48  ;;  %v991_v53 = vmul.f32 1.442695, %v990_v50 }
 0x99f   : > { %1450 = vpow2.f32 %v991_v53 }
 0x9a7   : > { %v1449_v49 = vpop.eup %1448 }
 0x9a8   : > { %v980_v51 = vmul.f32 1.0614054, %v1449_v49 }
 0x9a9   : > { %v1451_v61 = vpop.eup %1450 }
 0x9aa   : > { %v981_v52 = vadd.f32 -1.4531521, %v980_v51 }
 0x9ac   : > { %v982_v54 = vmul.f32 %v1449_v49, %v981_v52 }
 0x9ae   : > { %v983_v55 = vadd.f32 1.4214138, %v982_v54 }
 0x9b0   : > { %v984_v56 = vmul.f32 %v1449_v49, %v983_v55 }
 0x9b2   : > { %v985_v57 = vadd.f32 -0.28449672, %v984_v56 }
 0x9b4   : > { %v986_v58 = vmul.f32 %v1449_v49, %v985_v57 }
 0x9b6   : > { %v987_v59 = vadd.f32 0.2548296, %v986_v58 }
 0x9b8   : > { %v988_v60 = vmul.f32 %v1449_v49, %v987_v59 }
 0x9ba   : > { %v993_v62 = vmul.f32 %v1451_v61, %v988_v60 }
 0x9bc   : > { %v994_v63 = vsub.f32 1.0, %v993_v62 }
 0x9be   : > { %v996_v1 = vsub.f32 0.0, %v994_v63 }
 0x9c0   : > { %v997_v2 = vsel %vm995_vm9, %v996_v1, %v994_v63 }
 0x9c1   : > { %v998_v4 = vadd.f32 1.0, %v997_v2 }
 0x9c3   : > { %v999_v5 = vmul.f32 %v998_v4, %v973_v3 }
 0x9c5   : > { %v1000_v6 = vpack.c.bf16 %v999_v5, %v999_v5 }
 0x9c7   : > { %1321 = vmatmul.mubr.msk.bf16.vlgmr.msra.gmra.mrb[0].mxu0 %vm1033_vm10, %v1000_v6 }
 0xa9a   : > { %v1071_v10 = vpop.f32.mrb[0].mxu0 }
 0xa9b   : > { %v1077_v11 = vadd.f32 %v1071_v10, %v906_v9  ;;  %v1322_v12 = vpop.f32.mrb[1].mxu0 }
 0xa9c   : > { %v1074_v13 = vpop.f32.mrb[2].mxu0 }
 0xa9d   : > { %1078 = vst.msk [vmem:[%s482_s17] sm:$0xff] %vm489_vm0, %v1077_v11  ;;  %v1323_v14 = vpop.f32.mrb[3].mxu0 }
 0xa9e   : > { %1577 = shalt.err (!%p1574_p0)
}
 0xa9f   : > { %s1578_s15 = scalar_lea.hbm %s2036_s24, 128  ;;  %s1582_s20 = scalar_lea.hbm %s2126_s14, 256 }
 0xaa0   : > { %p1579_p6 = scmp.ne.s32.totalorder %s2036_s24, %s1578_s15  ;;  %p1583_p12 = scmp.lt.u32.totalorder %s2036_s24, %s2126_s14 }
 0xaa1   : > { %p1584_p10 = scmp.lt.u32.totalorder %s1582_s20, %s1578_s15  ;;  %p1586_p3 = scmp.lt.u32.totalorder %s1578_s15, %s2036_s24 }
 0xaa2   : > { %p1580_p5 = pnand %p1579_p6, %p2127_p4 }
 0xaa3   : > { %p1585_p2 = por %p1584_p10, %p1583_p12 }
 0xaa4   : > { %p1581_p9 = pneg %p1580_p5 }
 0xaa5   : > { %p1587_p7 = por %p1586_p3, %p1585_p2 }
 0xaa7   : > { %p1588_p8 = pnand %p1587_p7, %p1581_p9 }
 0xaa9   : > { %1591 = shalt.err (!%p1588_p8)
}
 0xaaa   : > { %1340 = dma.vmem_to_hbm [thread:$0]  (%p2127_p4), %s2038_s25, 128, %s2036_s24, %s1080_s29  }
 0xaab PF: > { %s2128_s21 = sld [smem:[#allocation20_spill]]  ;;  %s2129_s27 = sld [smem:[#allocation18_spill]] }
 0xaac   : > { %s2130_s13 = sld [smem:[#allocation23_spill]] }
 0xab1   : > { %p1367_p11 = scmp.ge.s32.totalorder %s2128_s21, 2  ;;  %s1105_s16 = sand.u32 1, %s2129_s27  }
 0xab2   : > { %p2131_p13 = scmp.ne.s32.totalorder %s2130_s13, 0  ;;  %s1106_s28 = scalar_lea.sflag [#allocation7], %s1105_s16 }
 0xab4   : > { %p1356_p1 = pnand %p1367_p11, %p2131_p13 }
 0xab6   : > { %1625 = dma.done.wait (!%p1356_p1), %s1106_s28, 128  }
 0xab7   : > { %1627 = vsyncadd (!%p1356_p1), %s1106_s28, 4294967168  ;;  %s2132_s28 = sld [smem:[#allocation21_spill]]  ;;  %s2133_s19 = sld [smem:[#allocation19_spill]] }
 0xab8   : > { %s2134_s27 = sld [smem:[#allocation22_spill]]  ;;  %s2135_s25 = smov %s1634_s26 }
 0xabd   : > { %p26_p0 = scmp.ge.s32.totalorder %s2132_s28, 4   ;;  %s2136_s26 = smov %s2133_s19 }
 0xabf   :  { %28 = sbr.rel (!%p26_p0) target bundleno = 8 (0x8), region = 160 }
 0xac6   :  { %1111 = vsyncpa [#allocation6], 1 }
 0xac7   :  { %1113 = vsyncpa [#allocation6 + $0x1], 1 }
 0xac8   :  { %1114 = vsyncpa [#allocation9], 1 }
 0xac9   :  { %1115 = vsyncpa [#allocation12], 1 }
 0xaca   :  { %1116 = vsyncpa [#allocation7], 1 }
 0xacb   :  { %1118 = vsyncpa [#allocation7 + $0x1], 1 }

</bundles_post_ra>
